<compile_context>
chip_gen: v7x
topology: tpu7x:2x2x1
jax: 0.10.0
libtpu: 0.0.40
codegen_flags: <defaults>
</compile_context>

<pallas_src>
import math
import functools

import jax
import jax.numpy as jnp
from jax import lax
from jax.experimental import pallas as pl
from jax.experimental.pallas import tpu as pltpu


# torch nn.GELU() default is the exact erf form.  The tanh approximation
# (max abs deviation ~3e-3 per activation) routes the transcendental to the
# EUP instead of a long VALU polynomial (perf review).  Set True for exact
# parity with torch; the self-check reference uses the same flag.
EXACT_GELU = False


def _gelu(x):
    if EXACT_GELU:
        return 0.5 * x * (1.0 + lax.erf(x * (1.0 / math.sqrt(2.0))))
    c = math.sqrt(2.0 / math.pi)
    return 0.5 * x * (1.0 + jnp.tanh(c * (x + 0.044715 * (x * x * x))))


def _ln_gelu_ch0(y, g, bt):
    """LayerNorm2d over the channel axis (axis 0 = sublanes) + GELU.

    y : (C, S) channel-on-sublane / spatial-on-lane.  The reduction is a
    tiny cross-sublane reduce (XLU); all elementwise work stays lane-dense.
    """
    mu = jnp.mean(y, axis=0, keepdims=True)
    var = jnp.mean(jnp.square(y - mu), axis=0, keepdims=True)
    y = (y - mu) * lax.rsqrt(var + 1e-6) * g + bt
    return _gelu(y)


# ----------------------------------------------------------------------------
# Fused kernel: sparse prompt embeddings + mask_downscaling
# ----------------------------------------------------------------------------

def _prompt_kernel(x1_ref, coords_ref, labels_ref, gauss_ref, table_ref,
                   w1_ref, b1_ref, g1_ref, bt1_ref,
                   w2_ref, b2_ref, g2_ref, bt2_ref,
                   w3_ref, b3_ref,
                   sparse_ref, dense_ref, *, inv_w, inv_h):
    # ---- sparse: point + box-corner embeddings (VPU/EUP only) -------------
    c = coords_ref[0]                                   # (Mp, 2)
    lab = labels_ref[0]                                 # (Mp, 1) int32
    g = gauss_ref[...]                                  # (2, D/2)
    cx = (c[:, 0:1] + 0.5) * (2.0 * inv_w) - 1.0
    cy = (c[:, 1:2] + 0.5) * (2.0 * inv_h) - 1.0
    pe = (2.0 * math.pi) * (cx * g[0:1, :] + cy * g[1:2, :])     # 2 FMAs
    emb = jnp.concatenate([jnp.sin(pe), jnp.cos(pe)], axis=-1)   # (Mp, D)
    emb = jnp.where(lab == -1, 0.0, emb)
    tbl = table_ref[...]                                # (8, D)
    # one-hot x table (K=8) replaced by 5 compare+select adds of table rows
    for k, row in ((-1, 0), (0, 1), (1, 2), (2, 3), (3, 4)):
        emb = emb + (lab == k).astype(jnp.float32) * tbl[row:row + 1, :]
    sparse_ref[0, 0] = emb

    # ---- dense: fused mask_downscaling, channel-major / lane-dense --------
    x = x1_ref[0]                                       # (16, S) rows (t2, t1)
    s = x.shape[1]
    w1 = w1_ref[...]                                    # (C1, 4)
    c1 = w1.shape[0]
    w2 = w2_ref[...]                                    # (4, C2, C1)
    c2 = w2.shape[1]

    # hoist lane-broadcasts of the per-channel params out of the tap loop
    b1f = jnp.broadcast_to(b1_ref[...], (c1, s))
    g1f = jnp.broadcast_to(g1_ref[...], (c1, s))
    t1f = jnp.broadcast_to(bt1_ref[...], (c1, s))

    acc = jnp.broadcast_to(b2_ref[...], (c2, s))        # start from conv2 bias
    for t2 in range(4):                                 # conv2 2x2 taps
        xt = x[t2 * 4:(t2 + 1) * 4, :]                  # (4, S) static slice
        # conv1 (2x2 s2, 1->C1) for the half-res pixels feeding tap t2 (MXU)
        y = jnp.dot(w1, xt, preferred_element_type=jnp.float32) + b1f
        y = _ln_gelu_ch0(y, g1f, t1f)                   # (C1, S)
        # conv2 partial contraction for tap t2 (MXU, no transposes/concats)
        acc = acc + jnp.dot(w2[t2], y, preferred_element_type=jnp.float32)
    a2 = _ln_gelu_ch0(acc,
                      jnp.broadcast_to(g2_ref[...], (c2, s)),
                      jnp.broadcast_to(bt2_ref[...], (c2, s)))   # (C2, S)

    # conv3 (1x1) on the MXU; a2 is already channel-major -> no a2.T.
    # TODO(synk): optional bf16 cast of (w3, a2) for v6e/v7x MXU; kept f32
    # for numerical parity with the torch reference.
    a3 = jnp.dot(w3_ref[...], a2, preferred_element_type=jnp.float32) + b3_ref[...]
    dense_ref[0] = a3                                   # (D, S) lane-dense store


# ----------------------------------------------------------------------------
# Wrapper
# ----------------------------------------------------------------------------

def _const_spec(shape):
    zeros = (0,) * len(shape)
    return pl.BlockSpec(shape, lambda bb, ss: zeros)


def _pick_spatial_chunks(n_sp):
    """Split the spatial (lane) axis so v7x's two TensorCores both get work
    at batch=1.  Chunks stay >= 512 lanes and 128-aligned (real SAM:
    Nsp=4096 -> 4 chunks of 1024); 1 chunk otherwise.  No effect on v5e/v6e
    beyond the ~0.35us/step grid overhead, which the size floor avoids."""
    for cnum in (4, 2):
        if n_sp % cnum == 0:
            ch = n_sp // cnum
            if ch >= 512 and ch % 128 == 0:
                return cnum
    return 1


@functools.partial(jax.jit, static_argnames=("input_h", "input_w"))
def prompt_encoder_forward(points, labels, boxes, masks, params, *,
                           input_h, input_w):
    """Forward equivalent to PromptEncoder.forward(points, boxes, masks)."""
    b, n, _ = points.shape
    d = params["table"].shape[1]
    _, _, h, w = masks.shape
    h4, w4 = h // 4, w // 4
    n_sp = h4 * w4
    n_pts = n + 2
    n_pad = -(-n_pts // 8) * 8
    s_chunks = _pick_spatial_chunks(n_sp)
    chunk = n_sp // s_chunks

    # ---- sparse prompt inputs: points + box corners, rows padded to 8k ----
    coords = jnp.concatenate([points, boxes.reshape(b, 2, 2)], axis=1)
    box_labels = jnp.broadcast_to(jnp.array([2, 3], jnp.int32), (b, 2))
    labs = jnp.concatenate([labels.astype(jnp.int32), box_labels], axis=1)
    coords = jnp.pad(coords, ((0, 0), (0, n_pad - n_pts), (0, 0)))
    labs = jnp.pad(labs, ((0, 0), (0, n_pad - n_pts)), constant_values=-1)
    labs = labs[..., None]                                        # (B, n_pad, 1)

    # ---- conv1 im2col: rows ordered (t2 = conv2 tap, t1 = conv1 tap) and
    #      quarter-res pixels on the last (lane) axis -> spatial chunking is a
    #      clean lane-aligned BlockSpec slice.
    x = masks.reshape(b, h4, 2, 2, w4, 2, 2)           # (b, p, di2, di1, q, dj2, dj1)
    x = x.transpose(0, 2, 5, 3, 6, 1, 4)               # (b, di2, dj2, di1, dj1, p, q)
    x1 = x.reshape(b, 16, n_sp)

    kern = functools.partial(_prompt_kernel,
                             inv_w=1.0 / float(input_w),
                             inv_h=1.0 / float(input_h))
    args = (x1, coords, labs,
            params["gauss"], params["table"],
            params["w1m"], params["b1c"], params["g1c"], params["bt1c"],
            params["w2m"], params["b2c"], params["g2c"], params["bt2c"],
            params["w3m"], params["b3c"])
    in_specs = [pl.BlockSpec((1, 16, chunk), lambda bb, ss: (bb, 0, ss)),
                pl.BlockSpec((1, n_pad, 2), lambda bb, ss: (bb, 0, 0)),
                pl.BlockSpec((1, n_pad, 1), lambda bb, ss: (bb, 0, 0))]
    in_specs += [_const_spec(a.shape) for a in args[3:]]
    out_shape = (jax.ShapeDtypeStruct((b, s_chunks, n_pad, d), jnp.float32),
                 jax.ShapeDtypeStruct((b, d, n_sp), jnp.float32))
    out_specs = (pl.BlockSpec((1, 1, n_pad, d), lambda bb, ss: (bb, ss, 0, 0)),
                 pl.BlockSpec((1, d, chunk), lambda bb, ss: (bb, 0, ss)))

    sparse_all, dense = pl.pallas_call(
        kern,
        out_shape=out_shape,
        grid=(b, s_chunks),
        in_specs=in_specs,
        out_specs=out_specs,
        compiler_params=pltpu.CompilerParams(
            dimension_semantics=("parallel", "parallel")),
    )(*args)

    sparse = sparse_all[:, 0, :n_pts, :]                # drop pad / dup chunks
    dense = dense.reshape(b, d, h4, w4)                 # free reshape (NCHW)
    # TODO(synk): masks=None / points=None / boxes=None branches and
    # get_dense_pe (dense PE grid / no_mask_embed broadcast) are not
    # implemented as kernels; this forward assumes all three prompts given.
    return sparse, dense


def pack_params(params, cfg):
    """Reshape / pack weights once, outside the jitted forward."""
    d = cfg["embed_dim"]
    c1 = cfg["mask_in_chans"] // 4
    c2 = cfg["mask_in_chans"]
    return {
        "gauss": params["gauss"],
        # embedding table padded to 8 rows for sublane alignment
        "table": jnp.concatenate(
            [params["not_a_point"], params["pe0"], params["pe1"],
             params["pe2"], params["pe3"],
             jnp.zeros((3, d), jnp.float32)], axis=0),
        "w1m": params["w1"].reshape(c1, 4),                            # (C1, 4) cols t1
        "w2m": params["w2"].transpose(2, 3, 0, 1).reshape(4, c2, c1),  # (t2, C2, C1)
        "w3m": params["w3"].reshape(d, c2),                            # (D, C2)
        "b1c": params["b1"].reshape(c1, 1),
        "g1c": params["g1"].reshape(c1, 1),
        "bt1c": params["bt1"].reshape(c1, 1),
        "b2c": params["b2"].reshape(c2, 1),
        "g2c": params["g2"].reshape(c2, 1),
        "bt2c": params["bt2"].reshape(c2, 1),
        "b3c": params["b3"].reshape(d, 1),
    }


# ----------------------------------------------------------------------------
# Pure-JAX reference (numerical self-check; same GELU flag as the kernel)
# ----------------------------------------------------------------------------

def reference_forward(points, labels, boxes, masks, params, cfg):
    h_in, w_in = cfg["input_image_size"]
    gauss = params["gauss"]

    def pe_encode(c):                       # c normalized to [0, 1]
        c = 2.0 * c - 1.0
        c = jnp.dot(c, gauss, precision=lax.Precision.HIGHEST)
        c = 2.0 * jnp.pi * c
        return jnp.concatenate([jnp.sin(c), jnp.cos(c)], axis=-1)

    def with_coords(pts):
        c = pts.astype(jnp.float32)
        c = c.at[..., 0].mul(1.0 / w_in)
        c = c.at[..., 1].mul(1.0 / h_in)
        return pe_encode(c)

    pe = with_coords(points + 0.5)
    lab = labels
    pe = jnp.where((lab == -1)[..., None], 0.0, pe)
    add = (lab == -1)[..., None] * params["not_a_point"][0]
    for k in range(4):
        add = add + (lab == k)[..., None] * params[f"pe{k}"][0]
    pt_emb = pe + add

    ce = with_coords(boxes.reshape(-1, 2, 2) + 0.5)
    ce = ce.at[:, 0, :].add(params["pe2"][0])
    ce = ce.at[:, 1, :].add(params["pe3"][0])
    sparse = jnp.concatenate([pt_emb, ce], axis=1)

    def conv(x, w, bvec, stride):
        y = lax.conv_general_dilated(
            x, w, (stride, stride), "VALID",
            dimension_numbers=("NCHW", "OIHW", "NCHW"),
            precision=lax.Precision.HIGHEST)
        return y + bvec[None, :, None, None]

    def ln2d(x, g, bt):
        mu = x.mean(axis=1, keepdims=True)
        var = ((x - mu) ** 2).mean(axis=1, keepdims=True)
        x = (x - mu) / jnp.sqrt(var + 1e-6)
        return x * g[None, :, None, None] + bt[None, :, None, None]

    x = _gelu(ln2d(conv(masks, params["w1"], params["b1"][0], 2),
                   params["g1"][0], params["bt1"][0]))
    x = _gelu(ln2d(conv(x, params["w2"], params["b2"][0], 2),
                   params["g2"][0], params["bt2"][0]))
    x = conv(x, params["w3"], params["b3"][0], 1)
    return sparse, x


# ----------------------------------------------------------------------------
# Main
# ----------------------------------------------------------------------------

if __name__ == "__main__":
    # Small-but-lane-friendly config (per perf review: last axis of stored
    # blocks >= 128): embed_dim=128, image_embedding_size=(16, 16),
    # input_image_size=(256, 256), mask_in_chans=16 -> masks are 64x64.
    cfg = dict(embed_dim=128, image_embedding_size=(16, 16),
               input_image_size=(256, 256), mask_in_chans=16)
    D, C1, C2 = cfg["embed_dim"], cfg["mask_in_chans"] // 4, cfg["mask_in_chans"]

    key = jax.random.PRNGKey(0)
    ks = jax.random.split(key, 24)

    params = {
        # PositionEmbeddingRandom gaussian matrix (scale = 1.0)
        "gauss": jax.random.normal(ks[0], (2, D // 2), jnp.float32),
        # nn.Embedding(1, D) weights
        "not_a_point": 0.5 * jax.random.normal(ks[1], (1, D), jnp.float32),
        "pe0": 0.5 * jax.random.normal(ks[2], (1, D), jnp.float32),
        "pe1": 0.5 * jax.random.normal(ks[3], (1, D), jnp.float32),
        "pe2": 0.5 * jax.random.normal(ks[4], (1, D), jnp.float32),
        "pe3": 0.5 * jax.random.normal(ks[5], (1, D), jnp.float32),
        # mask_downscaling parameters
        "w1": 0.2 * jax.random.normal(ks[6], (C1, 1, 2, 2), jnp.float32),
        "b1": 0.1 * jax.random.normal(ks[7], (1, C1), jnp.float32),
        "g1": 1.0 + 0.1 * jax.random.normal(ks[8], (1, C1), jnp.float32),
        "bt1": 0.1 * jax.random.normal(ks[9], (1, C1), jnp.float32),
        "w2": 0.2 * jax.random.normal(ks[10], (C2, C1, 2, 2), jnp.float32),
        "b2": 0.1 * jax.random.normal(ks[11], (1, C2), jnp.float32),
        "g2": 1.0 + 0.1 * jax.random.normal(ks[12], (1, C2), jnp.float32),
        "bt2": 0.1 * jax.random.normal(ks[13], (1, C2), jnp.float32),
        "w3": 0.2 * jax.random.normal(ks[14], (D, C2, 1, 1), jnp.float32),
        "b3": 0.1 * jax.random.normal(ks[15], (1, D), jnp.float32),
        # no_mask_embed unused here (masks are provided)
        "no_mask": 0.5 * jax.random.normal(ks[16], (1, D), jnp.float32),
    }

    B, N = 2, 5
    H_in, W_in = cfg["input_image_size"]
    Hm = 4 * cfg["image_embedding_size"][0]
    Wm = 4 * cfg["image_embedding_size"][1]
    points = jax.random.uniform(ks[17], (B, N, 2), jnp.float32) * W_in
    labels = jax.random.randint(ks[18], (B, N), 0, 4, jnp.int32)
    labels = labels.at[0, 0].set(-1)                    # exercise not_a_point path
    boxes = jax.random.uniform(ks[19], (B, 2, 2), jnp.float32) * W_in
    masks = jax.random.uniform(ks[20], (B, 1, Hm, Wm), jnp.float32)

    packed = pack_params(params, cfg)
    sparse, dense = prompt_encoder_forward(points, labels, boxes, masks, packed,
                                           input_h=H_in, input_w=W_in)
    sparse = jax.block_until_ready(sparse)
    dense = jax.block_until_ready(dense)

    assert sparse.shape == (B, N + 2, D), sparse.shape
    assert dense.shape == (B, D, cfg["image_embedding_size"][0],
                           cfg["image_embedding_size"][1]), dense.shape

    ref_sparse, ref_dense = reference_forward(points, labels, boxes, masks,
                                              params, cfg)
    assert jnp.allclose(sparse, ref_sparse, atol=1e-2, rtol=1e-2), "sparse mismatch"
    assert jnp.allclose(dense, ref_dense, atol=1e-2, rtol=1e-2), "dense mismatch"

    print("KERNEL_OK")
</pallas_src>

<mosaic_0001>
module attributes {stable_mosaic.version = 11 : i64} {
  func.func @_prompt_kernel(%arg0: i32, %arg1: i32, %arg2: memref<1x16x256xf32, #tpu.memory_space<vmem>>, %arg3: memref<1x8x2xf32, #tpu.memory_space<vmem>>, %arg4: memref<1x8x1xi32, #tpu.memory_space<vmem>>, %arg5: memref<2x64xf32, #tpu.memory_space<vmem>>, %arg6: memref<8x128xf32, #tpu.memory_space<vmem>>, %arg7: memref<4x4xf32, #tpu.memory_space<vmem>>, %arg8: memref<4x1xf32, #tpu.memory_space<vmem>>, %arg9: memref<4x1xf32, #tpu.memory_space<vmem>>, %arg10: memref<4x1xf32, #tpu.memory_space<vmem>>, %arg11: memref<4x16x4xf32, #tpu.memory_space<vmem>>, %arg12: memref<16x1xf32, #tpu.memory_space<vmem>>, %arg13: memref<16x1xf32, #tpu.memory_space<vmem>>, %arg14: memref<16x1xf32, #tpu.memory_space<vmem>>, %arg15: memref<128x16xf32, #tpu.memory_space<vmem>>, %arg16: memref<128x1xf32, #tpu.memory_space<vmem>>, %arg17: memref<1x1x8x128xf32, #tpu.memory_space<vmem>>, %arg18: memref<1x128x256xf32, #tpu.memory_space<vmem>>) attributes {dimension_semantics = [#tpu.dimension_semantics<parallel>, #tpu.dimension_semantics<parallel>], iteration_bounds = array<i64: 2, 1>, scalar_prefetch = 0 : i64, scratch_operands = 0 : i64, tpu.core_type = #tpu.core_type<tc>, window_params = [{transform_indices = @transform_0, window_bounds = array<i64: 1, 16, 256>}, {transform_indices = @transform_1, window_bounds = array<i64: 1, 8, 2>}, {transform_indices = @transform_2, window_bounds = array<i64: 1, 8, 1>}, {pipeline_mode = #tpu.pipeline_mode<synchronous>, transform_indices = @transform_3, window_bounds = array<i64: 2, 64>}, {pipeline_mode = #tpu.pipeline_mode<synchronous>, transform_indices = @transform_4, window_bounds = array<i64: 8, 128>}, {pipeline_mode = #tpu.pipeline_mode<synchronous>, transform_indices = @transform_5, window_bounds = array<i64: 4, 4>}, {pipeline_mode = #tpu.pipeline_mode<synchronous>, transform_indices = @transform_6, window_bounds = array<i64: 4, 1>}, {pipeline_mode = #tpu.pipeline_mode<synchronous>, transform_indices = @transform_7, window_bounds = array<i64: 4, 1>}, {pipeline_mode = #tpu.pipeline_mode<synchronous>, transform_indices = @transform_8, window_bounds = array<i64: 4, 1>}, {pipeline_mode = #tpu.pipeline_mode<synchronous>, transform_indices = @transform_9, window_bounds = array<i64: 4, 16, 4>}, {pipeline_mode = #tpu.pipeline_mode<synchronous>, transform_indices = @transform_10, window_bounds = array<i64: 16, 1>}, {pipeline_mode = #tpu.pipeline_mode<synchronous>, transform_indices = @transform_11, window_bounds = array<i64: 16, 1>}, {pipeline_mode = #tpu.pipeline_mode<synchronous>, transform_indices = @transform_12, window_bounds = array<i64: 16, 1>}, {pipeline_mode = #tpu.pipeline_mode<synchronous>, transform_indices = @transform_13, window_bounds = array<i64: 128, 16>}, {pipeline_mode = #tpu.pipeline_mode<synchronous>, transform_indices = @transform_14, window_bounds = array<i64: 128, 1>}, {transform_indices = @transform_15, window_bounds = array<i64: 1, 1, 8, 128>}, {transform_indices = @transform_16, window_bounds = array<i64: 1, 128, 256>}]} {
    %c0 = arith.constant 0 : index
    %c0_0 = arith.constant 0 : index
    %c0_1 = arith.constant 0 : index
    %0 = vector.load %arg3[%c0, %c0_0, %c0_1] : memref<1x8x2xf32, #tpu.memory_space<vmem>>, vector<1x8x2xf32>
    %1 = vector.shape_cast %0 : vector<1x8x2xf32> to vector<8x2xf32>
    %c0_2 = arith.constant 0 : index
    %c0_3 = arith.constant 0 : index
    %c0_4 = arith.constant 0 : index
    %2 = vector.load %arg4[%c0_2, %c0_3, %c0_4] : memref<1x8x1xi32, #tpu.memory_space<vmem>>, vector<1x8x1xi32>
    %3 = vector.shape_cast %2 : vector<1x8x1xi32> to vector<8x1xi32>
    %c0_5 = arith.constant 0 : index
    %c0_6 = arith.constant 0 : index
    %4 = vector.load %arg5[%c0_5, %c0_6] : memref<2x64xf32, #tpu.memory_space<vmem>>, vector<2x64xf32>
    %5 = vector.extract_strided_slice %1 {offsets = [0, 0], sizes = [8, 1], strides = [1, 1]} : vector<8x2xf32> to vector<8x1xf32>
    %cst = arith.constant 5.000000e-01 : f32
    %6 = vector.broadcast %cst : f32 to vector<8x1xf32>
    %7 = arith.addf %5, %6 : vector<8x1xf32>
    %cst_7 = arith.constant 7.812500e-03 : f32
    %8 = vector.broadcast %cst_7 : f32 to vector<8x1xf32>
    %9 = arith.mulf %7, %8 : vector<8x1xf32>
    %cst_8 = arith.constant 1.000000e+00 : f32
    %10 = vector.broadcast %cst_8 : f32 to vector<8x1xf32>
    %11 = arith.subf %9, %10 : vector<8x1xf32>
    %12 = vector.extract_strided_slice %1 {offsets = [0, 1], sizes = [8, 1], strides = [1, 1]} : vector<8x2xf32> to vector<8x1xf32>
    %cst_9 = arith.constant 5.000000e-01 : f32
    %13 = vector.broadcast %cst_9 : f32 to vector<8x1xf32>
    %14 = arith.addf %12, %13 : vector<8x1xf32>
    %cst_10 = arith.constant 7.812500e-03 : f32
    %15 = vector.broadcast %cst_10 : f32 to vector<8x1xf32>
    %16 = arith.mulf %14, %15 : vector<8x1xf32>
    %cst_11 = arith.constant 1.000000e+00 : f32
    %17 = vector.broadcast %cst_11 : f32 to vector<8x1xf32>
    %18 = arith.subf %16, %17 : vector<8x1xf32>
    %19 = vector.extract_strided_slice %4 {offsets = [0, 0], sizes = [1, 64], strides = [1, 1]} : vector<2x64xf32> to vector<1x64xf32>
    %20 = vector.broadcast %11 : vector<8x1xf32> to vector<8x64xf32>
    %21 = vector.broadcast %19 : vector<1x64xf32> to vector<8x64xf32>
    %22 = arith.mulf %20, %21 : vector<8x64xf32>
    %23 = vector.extract_strided_slice %4 {offsets = [1, 0], sizes = [1, 64], strides = [1, 1]} : vector<2x64xf32> to vector<1x64xf32>
    %24 = vector.broadcast %18 : vector<8x1xf32> to vector<8x64xf32>
    %25 = vector.broadcast %23 : vector<1x64xf32> to vector<8x64xf32>
    %26 = arith.mulf %24, %25 : vector<8x64xf32>
    %27 = arith.addf %22, %26 : vector<8x64xf32>
    %cst_12 = arith.constant 6.28318548 : f32
    %28 = vector.broadcast %cst_12 : f32 to vector<8x64xf32>
    %29 = arith.mulf %28, %27 : vector<8x64xf32>
    %30 = math.sin %29 : vector<8x64xf32>
    %31 = math.cos %29 : vector<8x64xf32>
    %32 = tpu.concatenate %30, %31 in 1 : vector<8x64xf32>, vector<8x64xf32> -> vector<8x128xf32>
    %c-1_i32 = arith.constant -1 : i32
    %33 = vector.broadcast %c-1_i32 : i32 to vector<8x1xi32>
    %34 = arith.cmpi eq, %3, %33 : vector<8x1xi32>
    %cst_13 = arith.constant 0.000000e+00 : f32
    %35 = vector.shape_cast %34 : vector<8x1xi1> to vector<8x1xi1>
    %36 = vector.broadcast %35 : vector<8x1xi1> to vector<8x128xi1>
    %37 = vector.broadcast %cst_13 : f32 to vector<8x128xf32>
    %38 = arith.select %36, %37, %32 : vector<8x128xi1>, vector<8x128xf32>
    %c0_14 = arith.constant 0 : index
    %c0_15 = arith.constant 0 : index
    %39 = vector.load %arg6[%c0_14, %c0_15] : memref<8x128xf32, #tpu.memory_space<vmem>>, vector<8x128xf32>
    %c-1_i32_16 = arith.constant -1 : i32
    %40 = vector.broadcast %c-1_i32_16 : i32 to vector<8x1xi32>
    %41 = arith.cmpi eq, %3, %40 : vector<8x1xi32>
    %42 = arith.extui %41 : vector<8x1xi1> to vector<8x1xi32>
    %43 = arith.sitofp %42 : vector<8x1xi32> to vector<8x1xf32>
    %44 = vector.extract_strided_slice %39 {offsets = [0, 0], sizes = [1, 128], strides = [1, 1]} : vector<8x128xf32> to vector<1x128xf32>
    %45 = vector.broadcast %43 : vector<8x1xf32> to vector<8x128xf32>
    %46 = vector.broadcast %44 : vector<1x128xf32> to vector<8x128xf32>
    %47 = arith.mulf %45, %46 : vector<8x128xf32>
    %48 = arith.addf %38, %47 : vector<8x128xf32>
    %c0_i32 = arith.constant 0 : i32
    %49 = vector.broadcast %c0_i32 : i32 to vector<8x1xi32>
    %50 = arith.cmpi eq, %3, %49 : vector<8x1xi32>
    %51 = arith.extui %50 : vector<8x1xi1> to vector<8x1xi32>
    %52 = arith.sitofp %51 : vector<8x1xi32> to vector<8x1xf32>
    %53 = vector.extract_strided_slice %39 {offsets = [1, 0], sizes = [1, 128], strides = [1, 1]} : vector<8x128xf32> to vector<1x128xf32>
    %54 = vector.broadcast %52 : vector<8x1xf32> to vector<8x128xf32>
    %55 = vector.broadcast %53 : vector<1x128xf32> to vector<8x128xf32>
    %56 = arith.mulf %54, %55 : vector<8x128xf32>
    %57 = arith.addf %48, %56 : vector<8x128xf32>
    %c1_i32 = arith.constant 1 : i32
    %58 = vector.broadcast %c1_i32 : i32 to vector<8x1xi32>
    %59 = arith.cmpi eq, %3, %58 : vector<8x1xi32>
    %60 = arith.extui %59 : vector<8x1xi1> to vector<8x1xi32>
    %61 = arith.sitofp %60 : vector<8x1xi32> to vector<8x1xf32>
    %62 = vector.extract_strided_slice %39 {offsets = [2, 0], sizes = [1, 128], strides = [1, 1]} : vector<8x128xf32> to vector<1x128xf32>
    %63 = vector.broadcast %61 : vector<8x1xf32> to vector<8x128xf32>
    %64 = vector.broadcast %62 : vector<1x128xf32> to vector<8x128xf32>
    %65 = arith.mulf %63, %64 : vector<8x128xf32>
    %66 = arith.addf %57, %65 : vector<8x128xf32>
    %c2_i32 = arith.constant 2 : i32
    %67 = vector.broadcast %c2_i32 : i32 to vector<8x1xi32>
    %68 = arith.cmpi eq, %3, %67 : vector<8x1xi32>
    %69 = arith.extui %68 : vector<8x1xi1> to vector<8x1xi32>
    %70 = arith.sitofp %69 : vector<8x1xi32> to vector<8x1xf32>
    %71 = vector.extract_strided_slice %39 {offsets = [3, 0], sizes = [1, 128], strides = [1, 1]} : vector<8x128xf32> to vector<1x128xf32>
    %72 = vector.broadcast %70 : vector<8x1xf32> to vector<8x128xf32>
    %73 = vector.broadcast %71 : vector<1x128xf32> to vector<8x128xf32>
    %74 = arith.mulf %72, %73 : vector<8x128xf32>
    %75 = arith.addf %66, %74 : vector<8x128xf32>
    %c3_i32 = arith.constant 3 : i32
    %76 = vector.broadcast %c3_i32 : i32 to vector<8x1xi32>
    %77 = arith.cmpi eq, %3, %76 : vector<8x1xi32>
    %78 = arith.extui %77 : vector<8x1xi1> to vector<8x1xi32>
    %79 = arith.sitofp %78 : vector<8x1xi32> to vector<8x1xf32>
    %80 = vector.extract_strided_slice %39 {offsets = [4, 0], sizes = [1, 128], strides = [1, 1]} : vector<8x128xf32> to vector<1x128xf32>
    %81 = vector.broadcast %79 : vector<8x1xf32> to vector<8x128xf32>
    %82 = vector.broadcast %80 : vector<1x128xf32> to vector<8x128xf32>
    %83 = arith.mulf %81, %82 : vector<8x128xf32>
    %84 = arith.addf %75, %83 : vector<8x128xf32>
    %c0_17 = arith.constant 0 : index
    %c0_18 = arith.constant 0 : index
    %c0_19 = arith.constant 0 : index
    %c0_20 = arith.constant 0 : index
    %85 = vector.load %arg17[%c0_17, %c0_18, %c0_19, %c0_20] : memref<1x1x8x128xf32, #tpu.memory_space<vmem>>, vector<1x1x8x128xf32>
    %86 = vector.shape_cast %85 : vector<1x1x8x128xf32> to vector<8x128xf32>
    %87 = vector.shape_cast %84 : vector<8x128xf32> to vector<1x1x8x128xf32>
    tpu.vector_store %arg17[%c0_17, %c0_18, %c0_19, %c0_20], %87 {strides = array<i32>} : memref<1x1x8x128xf32, #tpu.memory_space<vmem>>, vector<1x1x8x128xf32>,
    %c0_21 = arith.constant 0 : index
    %c0_22 = arith.constant 0 : index
    %c0_23 = arith.constant 0 : index
    %88 = vector.load %arg2[%c0_21, %c0_22, %c0_23] : memref<1x16x256xf32, #tpu.memory_space<vmem>>, vector<1x16x256xf32>
    %89 = vector.shape_cast %88 : vector<1x16x256xf32> to vector<16x256xf32>
    %c0_24 = arith.constant 0 : index
    %c0_25 = arith.constant 0 : index
    %90 = vector.load %arg7[%c0_24, %c0_25] : memref<4x4xf32, #tpu.memory_space<vmem>>, vector<4x4xf32>
    %c0_26 = arith.constant 0 : index
    %c0_27 = arith.constant 0 : index
    %c0_28 = arith.constant 0 : index
    %91 = vector.load %arg11[%c0_26, %c0_27, %c0_28] : memref<4x16x4xf32, #tpu.memory_space<vmem>>, vector<4x16x4xf32>
    %c0_29 = arith.constant 0 : index
    %c0_30 = arith.constant 0 : index
    %92 = vector.load %arg8[%c0_29, %c0_30] : memref<4x1xf32, #tpu.memory_space<vmem>>, vector<4x1xf32>
    %93 = vector.shape_cast %92 : vector<4x1xf32> to vector<4x1xf32>
    %94 = vector.broadcast %93 : vector<4x1xf32> to vector<4x256xf32>
    %c0_31 = arith.constant 0 : index
    %c0_32 = arith.constant 0 : index
    %95 = vector.load %arg9[%c0_31, %c0_32] : memref<4x1xf32, #tpu.memory_space<vmem>>, vector<4x1xf32>
    %96 = vector.shape_cast %95 : vector<4x1xf32> to vector<4x1xf32>
    %97 = vector.broadcast %96 : vector<4x1xf32> to vector<4x256xf32>
    %c0_33 = arith.constant 0 : index
    %c0_34 = arith.constant 0 : index
    %98 = vector.load %arg10[%c0_33, %c0_34] : memref<4x1xf32, #tpu.memory_space<vmem>>, vector<4x1xf32>
    %99 = vector.shape_cast %98 : vector<4x1xf32> to vector<4x1xf32>
    %100 = vector.broadcast %99 : vector<4x1xf32> to vector<4x256xf32>
    %c0_35 = arith.constant 0 : index
    %c0_36 = arith.constant 0 : index
    %101 = vector.load %arg12[%c0_35, %c0_36] : memref<16x1xf32, #tpu.memory_space<vmem>>, vector<16x1xf32>
    %102 = vector.shape_cast %101 : vector<16x1xf32> to vector<16x1xf32>
    %103 = vector.broadcast %102 : vector<16x1xf32> to vector<16x256xf32>
    %104 = vector.extract_strided_slice %89 {offsets = [0, 0], sizes = [4, 256], strides = [1, 1]} : vector<16x256xf32> to vector<4x256xf32>
    %cst_37 = arith.constant dense<0.000000e+00> : vector<4x256xf32>
    %105 = tpu.matmul %90, %104, %cst_37 {dimension_numbers = #tpu.dot_dimension_numbers<[1], [0], [0], [1], [0, 0, 1, 1], [], []>} : vector<4x4xf32>, vector<4x256xf32>, vector<4x256xf32> -> vector<4x256xf32>
    %106 = arith.addf %105, %94 : vector<4x256xf32>
    %cst_38 = arith.constant dense<0.000000e+00> : vector<256xf32>
    %107 = vector.multi_reduction <add>, %106, %cst_38 [0] : vector<4x256xf32> to vector<256xf32>
    %108 = vector.shape_cast %107 : vector<256xf32> to vector<1x256xf32>
    %cst_39 = arith.constant 4.000000e+00 : f32
    %109 = vector.broadcast %cst_39 : f32 to vector<1x256xf32>
    %110 = arith.divf %108, %109 : vector<1x256xf32>
    %111 = vector.broadcast %110 : vector<1x256xf32> to vector<4x256xf32>
    %112 = arith.subf %106, %111 : vector<4x256xf32>
    %113 = arith.mulf %112, %112 : vector<4x256xf32>
    %cst_40 = arith.constant dense<0.000000e+00> : vector<256xf32>
    %114 = vector.multi_reduction <add>, %113, %cst_40 [0] : vector<4x256xf32> to vector<256xf32>
    %115 = vector.shape_cast %114 : vector<256xf32> to vector<1x256xf32>
    %cst_41 = arith.constant 4.000000e+00 : f32
    %116 = vector.broadcast %cst_41 : f32 to vector<1x256xf32>
    %117 = arith.divf %115, %116 : vector<1x256xf32>
    %118 = vector.broadcast %110 : vector<1x256xf32> to vector<4x256xf32>
    %119 = arith.subf %106, %118 : vector<4x256xf32>
    %cst_42 = arith.constant 9.99999997E-7 : f32
    %120 = vector.broadcast %cst_42 : f32 to vector<1x256xf32>
    %121 = arith.addf %117, %120 : vector<1x256xf32>
    %122 = math.rsqrt %121 : vector<1x256xf32>
    %123 = vector.broadcast %122 : vector<1x256xf32> to vector<4x256xf32>
    %124 = arith.mulf %119, %123 : vector<4x256xf32>
    %125 = arith.mulf %124, %97 : vector<4x256xf32>
    %126 = arith.addf %125, %100 : vector<4x256xf32>
    %cst_43 = arith.constant 5.000000e-01 : f32
    %127 = vector.broadcast %cst_43 : f32 to vector<4x256xf32>
    %128 = arith.mulf %127, %126 : vector<4x256xf32>
    %129 = arith.mulf %126, %126 : vector<4x256xf32>
    %130 = arith.mulf %129, %126 : vector<4x256xf32>
    %cst_44 = arith.constant 4.471500e-02 : f32
    %131 = vector.broadcast %cst_44 : f32 to vector<4x256xf32>
    %132 = arith.mulf %131, %130 : vector<4x256xf32>
    %133 = arith.addf %126, %132 : vector<4x256xf32>
    %cst_45 = arith.constant 0.797884583 : f32
    %134 = vector.broadcast %cst_45 : f32 to vector<4x256xf32>
    %135 = arith.mulf %134, %133 : vector<4x256xf32>
    %136 = math.tanh %135 : vector<4x256xf32>
    %cst_46 = arith.constant 1.000000e+00 : f32
    %137 = vector.broadcast %cst_46 : f32 to vector<4x256xf32>
    %138 = arith.addf %137, %136 : vector<4x256xf32>
    %139 = arith.mulf %128, %138 : vector<4x256xf32>
    %140 = vector.extract_strided_slice %91 {offsets = [0, 0, 0], sizes = [1, 16, 4], strides = [1, 1, 1]} : vector<4x16x4xf32> to vector<1x16x4xf32>
    %141 = vector.shape_cast %140 : vector<1x16x4xf32> to vector<16x4xf32>
    %cst_47 = arith.constant dense<0.000000e+00> : vector<16x256xf32>
    %142 = tpu.matmul %141, %139, %cst_47 {dimension_numbers = #tpu.dot_dimension_numbers<[1], [0], [0], [1], [0, 0, 1, 1], [], []>} : vector<16x4xf32>, vector<4x256xf32>, vector<16x256xf32> -> vector<16x256xf32>
    %143 = arith.addf %103, %142 : vector<16x256xf32>
    %144 = vector.extract_strided_slice %89 {offsets = [4, 0], sizes = [4, 256], strides = [1, 1]} : vector<16x256xf32> to vector<4x256xf32>
    %cst_48 = arith.constant dense<0.000000e+00> : vector<4x256xf32>
    %145 = tpu.matmul %90, %144, %cst_48 {dimension_numbers = #tpu.dot_dimension_numbers<[1], [0], [0], [1], [0, 0, 1, 1], [], []>} : vector<4x4xf32>, vector<4x256xf32>, vector<4x256xf32> -> vector<4x256xf32>
    %146 = arith.addf %145, %94 : vector<4x256xf32>
    %cst_49 = arith.constant dense<0.000000e+00> : vector<256xf32>
    %147 = vector.multi_reduction <add>, %146, %cst_49 [0] : vector<4x256xf32> to vector<256xf32>
    %148 = vector.shape_cast %147 : vector<256xf32> to vector<1x256xf32>
    %cst_50 = arith.constant 4.000000e+00 : f32
    %149 = vector.broadcast %cst_50 : f32 to vector<1x256xf32>
    %150 = arith.divf %148, %149 : vector<1x256xf32>
    %151 = vector.broadcast %150 : vector<1x256xf32> to vector<4x256xf32>
    %152 = arith.subf %146, %151 : vector<4x256xf32>
    %153 = arith.mulf %152, %152 : vector<4x256xf32>
    %cst_51 = arith.constant dense<0.000000e+00> : vector<256xf32>
    %154 = vector.multi_reduction <add>, %153, %cst_51 [0] : vector<4x256xf32> to vector<256xf32>
    %155 = vector.shape_cast %154 : vector<256xf32> to vector<1x256xf32>
    %cst_52 = arith.constant 4.000000e+00 : f32
    %156 = vector.broadcast %cst_52 : f32 to vector<1x256xf32>
    %157 = arith.divf %155, %156 : vector<1x256xf32>
    %158 = vector.broadcast %150 : vector<1x256xf32> to vector<4x256xf32>
    %159 = arith.subf %146, %158 : vector<4x256xf32>
    %cst_53 = arith.constant 9.99999997E-7 : f32
    %160 = vector.broadcast %cst_53 : f32 to vector<1x256xf32>
    %161 = arith.addf %157, %160 : vector<1x256xf32>
    %162 = math.rsqrt %161 : vector<1x256xf32>
    %163 = vector.broadcast %162 : vector<1x256xf32> to vector<4x256xf32>
    %164 = arith.mulf %159, %163 : vector<4x256xf32>
    %165 = arith.mulf %164, %97 : vector<4x256xf32>
    %166 = arith.addf %165, %100 : vector<4x256xf32>
    %cst_54 = arith.constant 5.000000e-01 : f32
    %167 = vector.broadcast %cst_54 : f32 to vector<4x256xf32>
    %168 = arith.mulf %167, %166 : vector<4x256xf32>
    %169 = arith.mulf %166, %166 : vector<4x256xf32>
    %170 = arith.mulf %169, %166 : vector<4x256xf32>
    %cst_55 = arith.constant 4.471500e-02 : f32
    %171 = vector.broadcast %cst_55 : f32 to vector<4x256xf32>
    %172 = arith.mulf %171, %170 : vector<4x256xf32>
    %173 = arith.addf %166, %172 : vector<4x256xf32>
    %cst_56 = arith.constant 0.797884583 : f32
    %174 = vector.broadcast %cst_56 : f32 to vector<4x256xf32>
    %175 = arith.mulf %174, %173 : vector<4x256xf32>
    %176 = math.tanh %175 : vector<4x256xf32>
    %cst_57 = arith.constant 1.000000e+00 : f32
    %177 = vector.broadcast %cst_57 : f32 to vector<4x256xf32>
    %178 = arith.addf %177, %176 : vector<4x256xf32>
    %179 = arith.mulf %168, %178 : vector<4x256xf32>
    %180 = vector.extract_strided_slice %91 {offsets = [1, 0, 0], sizes = [1, 16, 4], strides = [1, 1, 1]} : vector<4x16x4xf32> to vector<1x16x4xf32>
    %181 = vector.shape_cast %180 : vector<1x16x4xf32> to vector<16x4xf32>
    %cst_58 = arith.constant dense<0.000000e+00> : vector<16x256xf32>
    %182 = tpu.matmul %181, %179, %cst_58 {dimension_numbers = #tpu.dot_dimension_numbers<[1], [0], [0], [1], [0, 0, 1, 1], [], []>} : vector<16x4xf32>, vector<4x256xf32>, vector<16x256xf32> -> vector<16x256xf32>
    %183 = arith.addf %143, %182 : vector<16x256xf32>
    %184 = vector.extract_strided_slice %89 {offsets = [8, 0], sizes = [4, 256], strides = [1, 1]} : vector<16x256xf32> to vector<4x256xf32>
    %cst_59 = arith.constant dense<0.000000e+00> : vector<4x256xf32>
    %185 = tpu.matmul %90, %184, %cst_59 {dimension_numbers = #tpu.dot_dimension_numbers<[1], [0], [0], [1], [0, 0, 1, 1], [], []>} : vector<4x4xf32>, vector<4x256xf32>, vector<4x256xf32> -> vector<4x256xf32>
    %186 = arith.addf %185, %94 : vector<4x256xf32>
    %cst_60 = arith.constant dense<0.000000e+00> : vector<256xf32>
    %187 = vector.multi_reduction <add>, %186, %cst_60 [0] : vector<4x256xf32> to vector<256xf32>
    %188 = vector.shape_cast %187 : vector<256xf32> to vector<1x256xf32>
    %cst_61 = arith.constant 4.000000e+00 : f32
    %189 = vector.broadcast %cst_61 : f32 to vector<1x256xf32>
    %190 = arith.divf %188, %189 : vector<1x256xf32>
    %191 = vector.broadcast %190 : vector<1x256xf32> to vector<4x256xf32>
    %192 = arith.subf %186, %191 : vector<4x256xf32>
    %193 = arith.mulf %192, %192 : vector<4x256xf32>
    %cst_62 = arith.constant dense<0.000000e+00> : vector<256xf32>
    %194 = vector.multi_reduction <add>, %193, %cst_62 [0] : vector<4x256xf32> to vector<256xf32>
    %195 = vector.shape_cast %194 : vector<256xf32> to vector<1x256xf32>
    %cst_63 = arith.constant 4.000000e+00 : f32
    %196 = vector.broadcast %cst_63 : f32 to vector<1x256xf32>
    %197 = arith.divf %195, %196 : vector<1x256xf32>
    %198 = vector.broadcast %190 : vector<1x256xf32> to vector<4x256xf32>
    %199 = arith.subf %186, %198 : vector<4x256xf32>
    %cst_64 = arith.constant 9.99999997E-7 : f32
    %200 = vector.broadcast %cst_64 : f32 to vector<1x256xf32>
    %201 = arith.addf %197, %200 : vector<1x256xf32>
    %202 = math.rsqrt %201 : vector<1x256xf32>
    %203 = vector.broadcast %202 : vector<1x256xf32> to vector<4x256xf32>
    %204 = arith.mulf %199, %203 : vector<4x256xf32>
    %205 = arith.mulf %204, %97 : vector<4x256xf32>
    %206 = arith.addf %205, %100 : vector<4x256xf32>
    %cst_65 = arith.constant 5.000000e-01 : f32
    %207 = vector.broadcast %cst_65 : f32 to vector<4x256xf32>
    %208 = arith.mulf %207, %206 : vector<4x256xf32>
    %209 = arith.mulf %206, %206 : vector<4x256xf32>
    %210 = arith.mulf %209, %206 : vector<4x256xf32>
    %cst_66 = arith.constant 4.471500e-02 : f32
    %211 = vector.broadcast %cst_66 : f32 to vector<4x256xf32>
    %212 = arith.mulf %211, %210 : vector<4x256xf32>
    %213 = arith.addf %206, %212 : vector<4x256xf32>
    %cst_67 = arith.constant 0.797884583 : f32
    %214 = vector.broadcast %cst_67 : f32 to vector<4x256xf32>
    %215 = arith.mulf %214, %213 : vector<4x256xf32>
    %216 = math.tanh %215 : vector<4x256xf32>
    %cst_68 = arith.constant 1.000000e+00 : f32
    %217 = vector.broadcast %cst_68 : f32 to vector<4x256xf32>
    %218 = arith.addf %217, %216 : vector<4x256xf32>
    %219 = arith.mulf %208, %218 : vector<4x256xf32>
    %220 = vector.extract_strided_slice %91 {offsets = [2, 0, 0], sizes = [1, 16, 4], strides = [1, 1, 1]} : vector<4x16x4xf32> to vector<1x16x4xf32>
    %221 = vector.shape_cast %220 : vector<1x16x4xf32> to vector<16x4xf32>
    %cst_69 = arith.constant dense<0.000000e+00> : vector<16x256xf32>
    %222 = tpu.matmul %221, %219, %cst_69 {dimension_numbers = #tpu.dot_dimension_numbers<[1], [0], [0], [1], [0, 0, 1, 1], [], []>} : vector<16x4xf32>, vector<4x256xf32>, vector<16x256xf32> -> vector<16x256xf32>
    %223 = arith.addf %183, %222 : vector<16x256xf32>
    %224 = vector.extract_strided_slice %89 {offsets = [12, 0], sizes = [4, 256], strides = [1, 1]} : vector<16x256xf32> to vector<4x256xf32>
    %cst_70 = arith.constant dense<0.000000e+00> : vector<4x256xf32>
    %225 = tpu.matmul %90, %224, %cst_70 {dimension_numbers = #tpu.dot_dimension_numbers<[1], [0], [0], [1], [0, 0, 1, 1], [], []>} : vector<4x4xf32>, vector<4x256xf32>, vector<4x256xf32> -> vector<4x256xf32>
    %226 = arith.addf %225, %94 : vector<4x256xf32>
    %cst_71 = arith.constant dense<0.000000e+00> : vector<256xf32>
    %227 = vector.multi_reduction <add>, %226, %cst_71 [0] : vector<4x256xf32> to vector<256xf32>
    %228 = vector.shape_cast %227 : vector<256xf32> to vector<1x256xf32>
    %cst_72 = arith.constant 4.000000e+00 : f32
    %229 = vector.broadcast %cst_72 : f32 to vector<1x256xf32>
    %230 = arith.divf %228, %229 : vector<1x256xf32>
    %231 = vector.broadcast %230 : vector<1x256xf32> to vector<4x256xf32>
    %232 = arith.subf %226, %231 : vector<4x256xf32>
    %233 = arith.mulf %232, %232 : vector<4x256xf32>
    %cst_73 = arith.constant dense<0.000000e+00> : vector<256xf32>
    %234 = vector.multi_reduction <add>, %233, %cst_73 [0] : vector<4x256xf32> to vector<256xf32>
    %235 = vector.shape_cast %234 : vector<256xf32> to vector<1x256xf32>
    %cst_74 = arith.constant 4.000000e+00 : f32
    %236 = vector.broadcast %cst_74 : f32 to vector<1x256xf32>
    %237 = arith.divf %235, %236 : vector<1x256xf32>
    %238 = vector.broadcast %230 : vector<1x256xf32> to vector<4x256xf32>
    %239 = arith.subf %226, %238 : vector<4x256xf32>
    %cst_75 = arith.constant 9.99999997E-7 : f32
    %240 = vector.broadcast %cst_75 : f32 to vector<1x256xf32>
    %241 = arith.addf %237, %240 : vector<1x256xf32>
    %242 = math.rsqrt %241 : vector<1x256xf32>
    %243 = vector.broadcast %242 : vector<1x256xf32> to vector<4x256xf32>
    %244 = arith.mulf %239, %243 : vector<4x256xf32>
    %245 = arith.mulf %244, %97 : vector<4x256xf32>
    %246 = arith.addf %245, %100 : vector<4x256xf32>
    %cst_76 = arith.constant 5.000000e-01 : f32
    %247 = vector.broadcast %cst_76 : f32 to vector<4x256xf32>
    %248 = arith.mulf %247, %246 : vector<4x256xf32>
    %249 = arith.mulf %246, %246 : vector<4x256xf32>
    %250 = arith.mulf %249, %246 : vector<4x256xf32>
    %cst_77 = arith.constant 4.471500e-02 : f32
    %251 = vector.broadcast %cst_77 : f32 to vector<4x256xf32>
    %252 = arith.mulf %251, %250 : vector<4x256xf32>
    %253 = arith.addf %246, %252 : vector<4x256xf32>
    %cst_78 = arith.constant 0.797884583 : f32
    %254 = vector.broadcast %cst_78 : f32 to vector<4x256xf32>
    %255 = arith.mulf %254, %253 : vector<4x256xf32>
    %256 = math.tanh %255 : vector<4x256xf32>
    %cst_79 = arith.constant 1.000000e+00 : f32
    %257 = vector.broadcast %cst_79 : f32 to vector<4x256xf32>
    %258 = arith.addf %257, %256 : vector<4x256xf32>
    %259 = arith.mulf %248, %258 : vector<4x256xf32>
    %260 = vector.extract_strided_slice %91 {offsets = [3, 0, 0], sizes = [1, 16, 4], strides = [1, 1, 1]} : vector<4x16x4xf32> to vector<1x16x4xf32>
    %261 = vector.shape_cast %260 : vector<1x16x4xf32> to vector<16x4xf32>
    %cst_80 = arith.constant dense<0.000000e+00> : vector<16x256xf32>
    %262 = tpu.matmul %261, %259, %cst_80 {dimension_numbers = #tpu.dot_dimension_numbers<[1], [0], [0], [1], [0, 0, 1, 1], [], []>} : vector<16x4xf32>, vector<4x256xf32>, vector<16x256xf32> -> vector<16x256xf32>
    %263 = arith.addf %223, %262 : vector<16x256xf32>
    %c0_81 = arith.constant 0 : index
    %c0_82 = arith.constant 0 : index
    %264 = vector.load %arg13[%c0_81, %c0_82] : memref<16x1xf32, #tpu.memory_space<vmem>>, vector<16x1xf32>
    %265 = vector.shape_cast %264 : vector<16x1xf32> to vector<16x1xf32>
    %266 = vector.broadcast %265 : vector<16x1xf32> to vector<16x256xf32>
    %c0_83 = arith.constant 0 : index
    %c0_84 = arith.constant 0 : index
    %267 = vector.load %arg14[%c0_83, %c0_84] : memref<16x1xf32, #tpu.memory_space<vmem>>, vector<16x1xf32>
    %268 = vector.shape_cast %267 : vector<16x1xf32> to vector<16x1xf32>
    %269 = vector.broadcast %268 : vector<16x1xf32> to vector<16x256xf32>
    %cst_85 = arith.constant dense<0.000000e+00> : vector<256xf32>
    %270 = vector.multi_reduction <add>, %263, %cst_85 [0] : vector<16x256xf32> to vector<256xf32>
    %271 = vector.shape_cast %270 : vector<256xf32> to vector<1x256xf32>
    %cst_86 = arith.constant 1.600000e+01 : f32
    %272 = vector.broadcast %cst_86 : f32 to vector<1x256xf32>
    %273 = arith.divf %271, %272 : vector<1x256xf32>
    %274 = vector.broadcast %273 : vector<1x256xf32> to vector<16x256xf32>
    %275 = arith.subf %263, %274 : vector<16x256xf32>
    %276 = arith.mulf %275, %275 : vector<16x256xf32>
    %cst_87 = arith.constant dense<0.000000e+00> : vector<256xf32>
    %277 = vector.multi_reduction <add>, %276, %cst_87 [0] : vector<16x256xf32> to vector<256xf32>
    %278 = vector.shape_cast %277 : vector<256xf32> to vector<1x256xf32>
    %cst_88 = arith.constant 1.600000e+01 : f32
    %279 = vector.broadcast %cst_88 : f32 to vector<1x256xf32>
    %280 = arith.divf %278, %279 : vector<1x256xf32>
    %281 = vector.broadcast %273 : vector<1x256xf32> to vector<16x256xf32>
    %282 = arith.subf %263, %281 : vector<16x256xf32>
    %cst_89 = arith.constant 9.99999997E-7 : f32
    %283 = vector.broadcast %cst_89 : f32 to vector<1x256xf32>
    %284 = arith.addf %280, %283 : vector<1x256xf32>
    %285 = math.rsqrt %284 : vector<1x256xf32>
    %286 = vector.broadcast %285 : vector<1x256xf32> to vector<16x256xf32>
    %287 = arith.mulf %282, %286 : vector<16x256xf32>
    %288 = arith.mulf %287, %266 : vector<16x256xf32>
    %289 = arith.addf %288, %269 : vector<16x256xf32>
    %cst_90 = arith.constant 5.000000e-01 : f32
    %290 = vector.broadcast %cst_90 : f32 to vector<16x256xf32>
    %291 = arith.mulf %290, %289 : vector<16x256xf32>
    %292 = arith.mulf %289, %289 : vector<16x256xf32>
    %293 = arith.mulf %292, %289 : vector<16x256xf32>
    %cst_91 = arith.constant 4.471500e-02 : f32
    %294 = vector.broadcast %cst_91 : f32 to vector<16x256xf32>
    %295 = arith.mulf %294, %293 : vector<16x256xf32>
    %296 = arith.addf %289, %295 : vector<16x256xf32>
    %cst_92 = arith.constant 0.797884583 : f32
    %297 = vector.broadcast %cst_92 : f32 to vector<16x256xf32>
    %298 = arith.mulf %297, %296 : vector<16x256xf32>
    %299 = math.tanh %298 : vector<16x256xf32>
    %cst_93 = arith.constant 1.000000e+00 : f32
    %300 = vector.broadcast %cst_93 : f32 to vector<16x256xf32>
    %301 = arith.addf %300, %299 : vector<16x256xf32>
    %302 = arith.mulf %291, %301 : vector<16x256xf32>
    %c0_94 = arith.constant 0 : index
    %c0_95 = arith.constant 0 : index
    %303 = vector.load %arg15[%c0_94, %c0_95] : memref<128x16xf32, #tpu.memory_space<vmem>>, vector<128x16xf32>
    %cst_96 = arith.constant dense<0.000000e+00> : vector<128x256xf32>
    %304 = tpu.matmul %303, %302, %cst_96 {dimension_numbers = #tpu.dot_dimension_numbers<[1], [0], [0], [1], [0, 0, 1, 1], [], []>} : vector<128x16xf32>, vector<16x256xf32>, vector<128x256xf32> -> vector<128x256xf32>
    %c0_97 = arith.constant 0 : index
    %c0_98 = arith.constant 0 : index
    %305 = vector.load %arg16[%c0_97, %c0_98] : memref<128x1xf32, #tpu.memory_space<vmem>>, vector<128x1xf32>
    %306 = vector.broadcast %305 : vector<128x1xf32> to vector<128x256xf32>
    %307 = arith.addf %304, %306 : vector<128x256xf32>
    %c0_99 = arith.constant 0 : index
    %c0_100 = arith.constant 0 : index
    %c0_101 = arith.constant 0 : index
    %308 = vector.load %arg18[%c0_99, %c0_100, %c0_101] : memref<1x128x256xf32, #tpu.memory_space<vmem>>, vector<1x128x256xf32>
    %309 = vector.shape_cast %308 : vector<1x128x256xf32> to vector<128x256xf32>
    %310 = vector.shape_cast %307 : vector<128x256xf32> to vector<1x128x256xf32>
    tpu.vector_store %arg18[%c0_99, %c0_100, %c0_101], %310 {strides = array<i32>} : memref<1x128x256xf32, #tpu.memory_space<vmem>>, vector<1x128x256xf32>,
    return
  }
  func.func @transform_0(%arg0: i32, %arg1: i32) -> (i32, i32, i32) {
    %c0_i32 = arith.constant 0 : i32
    %c0_i32_0 = arith.constant 0 : i32
    return %arg0, %c0_i32, %arg1 : i32, i32, i32
  }
  func.func @transform_1(%arg0: i32, %arg1: i32) -> (i32, i32, i32) {
    %c0_i32 = arith.constant 0 : i32
    %c0_i32_0 = arith.constant 0 : i32
    %c0_i32_1 = arith.constant 0 : i32
    return %arg0, %c0_i32, %c0_i32_0 : i32, i32, i32
  }
  func.func @transform_2(%arg0: i32, %arg1: i32) -> (i32, i32, i32) {
    %c0_i32 = arith.constant 0 : i32
    %c0_i32_0 = arith.constant 0 : i32
    %c0_i32_1 = arith.constant 0 : i32
    return %arg0, %c0_i32, %c0_i32_0 : i32, i32, i32
  }
  func.func @transform_3(%arg0: i32, %arg1: i32) -> (i32, i32) {
    %c0_i32 = arith.constant 0 : i32
    %c0_i32_0 = arith.constant 0 : i32
    %c0_i32_1 = arith.constant 0 : i32
    return %c0_i32, %c0_i32_0 : i32, i32
  }
  func.func @transform_4(%arg0: i32, %arg1: i32) -> (i32, i32) {
    %c0_i32 = arith.constant 0 : i32
    %c0_i32_0 = arith.constant 0 : i32
    %c0_i32_1 = arith.constant 0 : i32
    return %c0_i32, %c0_i32_0 : i32, i32
  }
  func.func @transform_5(%arg0: i32, %arg1: i32) -> (i32, i32) {
    %c0_i32 = arith.constant 0 : i32
    %c0_i32_0 = arith.constant 0 : i32
    %c0_i32_1 = arith.constant 0 : i32
    return %c0_i32, %c0_i32_0 : i32, i32
  }
  func.func @transform_6(%arg0: i32, %arg1: i32) -> (i32, i32) {
    %c0_i32 = arith.constant 0 : i32
    %c0_i32_0 = arith.constant 0 : i32
    %c0_i32_1 = arith.constant 0 : i32
    return %c0_i32, %c0_i32_0 : i32, i32
  }
  func.func @transform_7(%arg0: i32, %arg1: i32) -> (i32, i32) {
    %c0_i32 = arith.constant 0 : i32
    %c0_i32_0 = arith.constant 0 : i32
    %c0_i32_1 = arith.constant 0 : i32
    return %c0_i32, %c0_i32_0 : i32, i32
  }
  func.func @transform_8(%arg0: i32, %arg1: i32) -> (i32, i32) {
    %c0_i32 = arith.constant 0 : i32
    %c0_i32_0 = arith.constant 0 : i32
    %c0_i32_1 = arith.constant 0 : i32
    return %c0_i32, %c0_i32_0 : i32, i32
  }
  func.func @transform_9(%arg0: i32, %arg1: i32) -> (i32, i32, i32) {
    %c0_i32 = arith.constant 0 : i32
    %c0_i32_0 = arith.constant 0 : i32
    %c0_i32_1 = arith.constant 0 : i32
    %c0_i32_2 = arith.constant 0 : i32
    return %c0_i32, %c0_i32_0, %c0_i32_1 : i32, i32, i32
  }
  func.func @transform_10(%arg0: i32, %arg1: i32) -> (i32, i32) {
    %c0_i32 = arith.constant 0 : i32
    %c0_i32_0 = arith.constant 0 : i32
    %c0_i32_1 = arith.constant 0 : i32
    return %c0_i32, %c0_i32_0 : i32, i32
  }
  func.func @transform_11(%arg0: i32, %arg1: i32) -> (i32, i32) {
    %c0_i32 = arith.constant 0 : i32
    %c0_i32_0 = arith.constant 0 : i32
    %c0_i32_1 = arith.constant 0 : i32
    return %c0_i32, %c0_i32_0 : i32, i32
  }
  func.func @transform_12(%arg0: i32, %arg1: i32) -> (i32, i32) {
    %c0_i32 = arith.constant 0 : i32
    %c0_i32_0 = arith.constant 0 : i32
    %c0_i32_1 = arith.constant 0 : i32
    return %c0_i32, %c0_i32_0 : i32, i32
  }
  func.func @transform_13(%arg0: i32, %arg1: i32) -> (i32, i32) {
    %c0_i32 = arith.constant 0 : i32
    %c0_i32_0 = arith.constant 0 : i32
    %c0_i32_1 = arith.constant 0 : i32
    return %c0_i32, %c0_i32_0 : i32, i32
  }
  func.func @transform_14(%arg0: i32, %arg1: i32) -> (i32, i32) {
    %c0_i32 = arith.constant 0 : i32
    %c0_i32_0 = arith.constant 0 : i32
    %c0_i32_1 = arith.constant 0 : i32
    return %c0_i32, %c0_i32_0 : i32, i32
  }
  func.func @transform_15(%arg0: i32, %arg1: i32) -> (i32, i32, i32, i32) {
    %c0_i32 = arith.constant 0 : i32
    %c0_i32_0 = arith.constant 0 : i32
    %c0_i32_1 = arith.constant 0 : i32
    return %arg0, %arg1, %c0_i32, %c0_i32_0 : i32, i32, i32, i32
  }
  func.func @transform_16(%arg0: i32, %arg1: i32) -> (i32, i32, i32) {
    %c0_i32 = arith.constant 0 : i32
    %c0_i32_0 = arith.constant 0 : i32
    return %arg0, %c0_i32, %arg1 : i32, i32, i32
  }
}

</mosaic_0001>

<bundles_post_ra>
// kernel: prompt_encoder_forward.1
= control target key start
LH: loop header
LB: loop body
LE: loop exit
PB: predicated region body
PF: predicated region fallthrough
CT: control target
= control target key end

     0   :  { %s2854_s21 = smov 0   ;;  %s2856_s22 = smov 0   ;;  %s3481_s0 = inlined_call_operand.vmem [shape: f32[2,16,256], index: 0, kind: input, shape index: {}]   ;;  %s3482_s1 = inlined_call_operand.vmem [shape: f32[2,8,2], index: 1, kind: input, shape index: {}]   ;;  %s3483_s2 = inlined_call_operand.vmem [shape: s32[2,8,1], index: 2, kind: input, shape index: {}]   ;;  %s3484_s3 = inlined_call_operand.vmem [shape: f32[2,64], index: 3, kind: input, shape index: {}]   ;;  %s3485_s4 = inlined_call_operand.vmem [shape: f32[8,128], index: 4, kind: input, shape index: {}]   ;;  %s3486_s5 = inlined_call_operand.vmem [shape: f32[4,4], index: 5, kind: input, shape index: {}]   ;;  %s3487_s6 = inlined_call_operand.vmem [shape: f32[4,1], index: 6, kind: input, shape index: {}]   ;;  %s3488_s7 = inlined_call_operand.vmem [shape: f32[4,1], index: 7, kind: input, shape index: {}]   ;;  %s3489_s8 = inlined_call_operand.vmem [shape: f32[4,1], index: 8, kind: input, shape index: {}]   ;;  %s3490_s9 = inlined_call_operand.vmem [shape: f32[4,16,4], index: 9, kind: input, shape index: {}]   ;;  %s3491_s10 = inlined_call_operand.vmem [shape: f32[16,1], index: 10, kind: input, shape index: {}]   ;;  %s3492_s11 = inlined_call_operand.vmem [shape: f32[16,1], index: 11, kind: input, shape index: {}]   ;;  %s3493_s12 = inlined_call_operand.vmem [shape: f32[16,1], index: 12, kind: input, shape index: {}]   ;;  %s3494_s13 = inlined_call_operand.vmem [shape: f32[128,16], index: 13, kind: input, shape index: {}]   ;;  %s3495_s14 = inlined_call_operand.vmem [shape: f32[128,1], index: 14, kind: input, shape index: {}]   ;;  %s3496_s15 = inlined_call_operand.vmem [shape: f32[2,1,8,128], index: 15, kind: output, shape index: {0}]   ;;  %s3497_s16 = inlined_call_operand.vmem [shape: f32[2,128,256], index: 16, kind: output, shape index: {1}]  }
   0x1   :  { %3498 = sst [smem:[#allocation2_spill]] %s3481_s0  ;;  %s2858_s23 = smov 0  }
   0x2 LB: > { %s39_s24 = sadd.s32 1, %s2753_s22  ;;  %p2543_p0 = scmp.ge.s32.totalorder %s2757_s23, 1  ;;  %s2757_s23 = sphi %s2858_s23, %s27_s23   ;;  %s2753_s22 = sphi %s2856_s22, %s3501_s22   ;;  %s2749_s21 = sphi %s2854_s21, %s3500_s21  }
   0x3   : > { %p41_p1 = scmp.ge.s32.totalorder %s39_s24, 2  ;;  %p506_p2 = scmp.lt.s32.totalorder %s2757_s23, 3 }
   0x5   : > { %s3503_s24 = smov (%p41_p1, %s39_s24), 0  ;;  %p507_p3 = pnand %p2543_p0, %p506_p2 }
   0x6   : > { %v944_v0 = vld [vmem:[%s3487_s6] sm:$0xf] (!%p507_p3)  ;;  %p580_p4 = scmp.lt.s32.totalorder (!%p507_p3), %s2749_s21, 1  ;;  %v2759_v1 = vmov (!%p507_p3), 0   ;;  %v2760_v4 = vmov (!%p507_p3), 0.0   ;;  %vm978_vm0 = vcmask (!%p507_p3), 1043456   ;;  %v625_v45 = vlaneseq (!%p507_p3) }
   0x7   : > { %510 = sbr.rel (%p507_p3) target bundleno = 898 (0x382), region = 80  ;;  %2673 = vset.pattern.permute.xlu0 (!%p507_p3), %v2759_v1  ;;  %2674 = vset.pattern.permute.xlu1 (!%p507_p3), %v2759_v1  ;;  %v956_v2 = vld [vmem:[%s3489_s8] sm:$0xf] (!%p507_p3)  ;;  %s3499_s25 = sld [smem:[#allocation2_spill]] (!%p507_p3)  ;;  %vm974_vm1 = vcmask (!%p507_p3), 31744   ;;  %v963_v11 = vld [vmem:[%s3491_s10 + $0x8] sm:$0xff] (!%p507_p3) }
   0x8   : > { %947 = vperm.xlu0 (!%p507_p3), %2673, %v944_v0   ;;  %959 = vperm.xlu1 (!%p507_p3), %2674, %v956_v2   ;;  %v950_v3 = vld [vmem:[%s3488_s7] sm:$0xf] (!%p507_p3)  ;;  %v1917_v16 = vld [vmem:[%s3492_s11 + $0x8] sm:$0xff] (!%p507_p3)  ;;  %v2761_v28 = vmov (!%p507_p3), 1   ;;  %v2052_v32 = vld [vmem:[%s3495_s14 + $0x18] sm:$0xff] (!%p507_p3)  ;;  %v2979_v47 = vshrl.u32 (!%p507_p3), %v625_v45, 7 }
   0x9   : > { %1049 = vmatprep.mubr.f32.mxu0 (!%p507_p3), %v2760_v4  ;;  %v962_v5 = vld [vmem:[%s3491_s10] sm:$0xff] (!%p507_p3)  ;;  %1197 = vmatprep.mubr.f32.mxu1 (!%p507_p3), %v2760_v4  ;;  %v1929_v23 = vld [vmem:[%s3493_s12 + $0x8] sm:$0xff] (!%p507_p3)  ;;  %v2056_v34 = vld [vmem:[%s3495_s14 + $0x38] sm:$0xff] (!%p507_p3) }
   0xa   : > { %v935_v8 = vld [vmem:[%s3486_s5] sm:$0xf] (!%p507_p3)  ;;  %v2050_v31 = vld [vmem:[%s3495_s14 + $0x8] sm:$0xff] (!%p507_p3)  ;;  %v2060_v36 = vld [vmem:[%s3495_s14 + $0x58] sm:$0xff] (!%p507_p3)  ;;  %v627_v50 = vsub.s32 (!%p507_p3), 0, %v2979_v47  ;;  %v636_v53 = vsub.s32 (!%p507_p3), 1, %v2979_v47 }
   0xb   : > { %v1916_v12 = vld [vmem:[%s3492_s11] sm:$0xff] (!%p507_p3)  ;;  %v2054_v33 = vld [vmem:[%s3495_s14 + $0x28] sm:$0xff] (!%p507_p3) }
   0xc   : > { %953 = vperm.xlu0 (!%p507_p3), %2673, %v950_v3   ;;  %966 = vperm.xlu1 (!%p507_p3), %2674, %v962_v5   ;;  %v1928_v20 = vld [vmem:[%s3493_s12] sm:$0xff] (!%p507_p3)  ;;  %v2058_v35 = vld [vmem:[%s3495_s14 + $0x48] sm:$0xff] (!%p507_p3) }
   0xd   : > { %v2062_v37 = vld [vmem:[%s3495_s14 + $0x68] sm:$0xff] (!%p507_p3)  ;;  %v616_v52 = vld [vmem:[%s3484_s3] sm:$0x3] (!%p507_p3) }
   0xe   : > { %s3505_s21 = smov (!%p580_p4, %s2749_s21), 1  ;;  %v628_v55 = vrot.slane %v616_v52, %v627_v50  ;;  %v637_v57 = vrot.slane %v616_v52, %v636_v53 }
   0xf   : > { %s2611_s18 = sshll.u32 %s3505_s21, 5  ;;  %s2898_s29 = sshll.u32 %s3505_s21, 3 }
  0x10   : > { %s587_s26 = scalar_lea.vmem %s3499_s25, %s2611_s18  ;;  %s592_s19 = scalar_lea.vmem %s3482_s1, %s2898_s29  ;;  %971 = vperm.xlu0 %2673, %v963_v11   ;;  %1920 = vperm.xlu1 %2674, %v1916_v12   ;;  %v2763_v12 = vmov 920167782  }
  0x11   : > { %v932_v6 = vld [vmem:[%s587_s26 + $0x8] sm:$0xff]  ;;  %v931_v7 = vld [vmem:[%s587_s26] sm:$0xff]  ;;  %v934_v14 = vld [vmem:[%s587_s26 + $0x18] sm:$0xff]  ;;  %s596_s17 = scalar_lea.vmem %s3483_s2, %s2898_s29  ;;  %s2768_s18 = smov 64  }
  0x12   : > { %2565 = vmatprep.subr.msk.mxu0 %vm978_vm0, %v932_v6  ;;  %v1215_v9 = vrot.slane %v932_v6, 4  ;;  %v1214_v10 = vrot.slane %v931_v7, 4  ;;  %v614_v13 = vld [vmem:[%s592_s19] sm:$0xff]  ;;  %v933_v17 = vld [vmem:[%s587_s26 + $0x10] sm:$0xff]  ;;  %v1683_v19 = vrot.slane %v934_v14, 4  ;;  %s603_s20 = scalar_lea.vmem %s3496_s15, %s2898_s29  ;;  %s2612_s29 = sshll.u32 %s3505_s21, 8 }
  0x13   : > { %2566 = vmatpush1.msk.msra.mxu0 %vm978_vm0, %v931_v7  ;;  %v617_v15 = vadd.f32 0.5, %v614_v13  ;;  %v1682_v21 = vrot.slane %v933_v17, 4  ;;  %v615_v22 = vld [vmem:[%s596_s17] sm:$0xff] }
  0x14   : > { %2567 = vmatmul.mubr.msk.f32.vlgmr.msra.gmra.mrb[0].mxu0 %vm974_vm1, %v935_v8  ;;  %2572 = vmatprep.subr.msk.mxu0 %vm978_vm0, %v1215_v9  ;;  %vm854_vm2 = vcmp.eq.s32.totalorder %v615_v22, 4294967295  ;;  %vm888_vm3 = vcmp.eq.s32.totalorder %v615_v22, 1  ;;  %vm902_vm4 = vcmp.eq.s32.totalorder %v615_v22, 2  ;;  %vm916_vm5 = vcmp.eq.s32.totalorder %v615_v22, 3 }
  0x15   : > { %2573 = vmatpush1.msk.msra.mxu0 %vm978_vm0, %v1214_v10  ;;  %1284 = vmatprep.mubr.f32.mxu0 %v2760_v4  ;;  %v618_v18 = vmul.f32 0.0078125, %v617_v15  ;;  %v855_v25 = vsel %vm854_vm2, 1, %v2759_v1  ;;  %v2562_v26 = vsel %vm888_vm3, 1.0, %v2760_v4  ;;  %v2563_v27 = vsel %vm902_vm4, 1.0, %v2760_v4 }
  0x16   : > { %2579 = vmatprep.subr.msk.mxu0 %vm978_vm0, %v934_v14  ;;  %1925 = vperm.xlu0 %2673, %v1917_v16   ;;  %v2682_v29 = vpack.i.bf16 %v2563_v27, %v2562_v26  ;;  %v2564_v30 = vsel %vm916_vm5, 1.0, %v2760_v4  ;;  %v2560_v38 = vsel %vm854_vm2, 1.0, %v2760_v4  ;;  %vm874_vm6 = vcmp.eq.s32.totalorder %v615_v22, 0 }
  0x17   : > { %1932 = vperm.xlu1 %2674, %v1928_v20   ;;  %v2551_v24 = vadd.f32 -1.0, %v618_v18  ;;  %v2561_v39 = vsel %vm874_vm6, 1.0, %v2760_v4  ;;  %v2762_v10 = vmov 2102212464   ;;  %v2764_v15 = vmov 683565275  }
  0x18   : > { %2574 = vmatmul.mubr.msk.f32.vlgmr.msra.gmra.mrb[2].mxu0 %vm974_vm1, %v935_v8  ;;  %v2677_v40 = vpack.i.bf16 %v2561_v39, %v2560_v38  ;;  %v2767_v22 = vmov 1326507024  }
  0x19   : > { %2580 = vmatpush1.msk.msra.mxu0 %vm978_vm0, %v933_v17  ;;  %1518 = vmatprep.mubr.f32.mxu0 %v2760_v4  ;;  %v2765_v17 = vmov 2475754826  }
  0x1a   : > { %2586 = vmatprep.subr.msk.mxu0 %vm978_vm0, %v1683_v19  ;;  %1937 = vperm.xlu0 %2673, %v1929_v23   ;;  %v2766_v19 = vmov 2131351028  }
  0x1b   : > { %622 = vperm.xlu1 %2674, %v2551_v24  }
  0x1c   : > { %2581 = vmatmul.mubr.msk.f32.vlgmr.msra.gmra.mrb[4].mxu0 %vm974_vm1, %v935_v8 }
  0x1d   : > { %2587 = vmatpush1.msk.msra.mxu0 %vm978_vm0, %v1682_v21  ;;  %1752 = vmatprep.mubr.f32.mxu0 %v2760_v4 }
  0x1e   : > { %2675 = vset.pattern.permute.xlu0 %v2761_v28 }
  0x1f   : > { %631 = vperm.xlu0 %2675, %v2551_v24   ;;  %857 = vperm.xlu1 %2674, %v855_v25  }
  0x20   : > { %2588 = vmatmul.mubr.msk.f32.vlgmr.msra.gmra.mrb[6].mxu0 %vm974_vm1, %v935_v8 }
  0x21   : > { %2258 = vmatprep.mubr.f32.mxu0 %v2760_v4 }
  0x23   : > { %2683 = vperm.xlu1 %2674, %v2682_v29   ;;  %2676 = vset.pattern.permute.xlu0 %v2759_v1 }
  0x24   : > { %2678 = vperm.xlu0 %2676, %v2677_v40  }
  0x27   : > { %921 = vperm.xlu1 %2674, %v2564_v30  }
  0x2b   : > { %2072 = vperm.xlu1 %2674, %v2050_v31  }
  0x2f   : > { %2082 = vperm.xlu1 %2674, %v2052_v32  }
  0x33   : > { %2092 = vperm.xlu1 %2674, %v2054_v33  }
  0x37   : > { %2102 = vperm.xlu1 %2674, %v2056_v34  }
  0x3b   : > { %2112 = vperm.xlu1 %2674, %v2058_v35  }
  0x3f   : > { %2122 = vperm.xlu1 %2674, %v2060_v36  }
  0x43   : > { %2132 = vperm.xlu1 %2674, %v2062_v37  }
  0x87   : > { %v2969_v41 = vpop.permute.xlu0 %947  ;;  %v2971_v42 = vpop.permute.xlu1 %959 }
  0x8b   : > { %v2973_v43 = vpop.permute.xlu0 %953  ;;  %v2975_v44 = vpop.permute.xlu1 %966 }
  0x8f   : > { %v2977_v46 = vpop.permute.xlu0 %971  ;;  %v2981_v48 = vpop.permute.xlu1 %1920 }
  0x95   : > { %v2983_v49 = vpop.permute.xlu0 %1925 }
  0x96   : > { %v2986_v51 = vpop.permute.xlu1 %1932 }
  0x99   : > { %v2992_v54 = vpop.permute.xlu0 %1937 }
  0x9a   : > { %v623_v56 = vpop.permute.xlu1 %622 }
  0x9b   : > { %v629_v58 = vmul.f32 %v628_v55, %v623_v56 }
  0x9e   : > { %v632_v59 = vpop.permute.xlu0 %631 }
  0x9f   : > { %v638_v60 = vmul.f32 %v637_v57, %v632_v59 }
  0xa1   : > { %v639_v61 = vadd.f32 %v638_v60, %v629_v58 }
  0xa3   : > { %v2998_v62 = vmul.f32 6.2831855, %v639_v61 }
  0xa5   : > { %v644_v63 = vand.u32 2139095040, %v2998_v62  ;;  %v641_v2 = vand.u32 2147483647, %v2998_v62  ;;  %vm643_vm14 = vcmp.lt.s32.totalorder %v2998_v62, 0  ;;  %vm733_vm5 = vweird.f32 %v2998_v62 }
  0xa7   : > { %v645_v0 = vshrl.u32 %v644_v63, 23  ;;  %v648_v6 = vand.u32 8388607, %v641_v2  ;;  %vm642_vm15 = vcmp.le.f32.partialorder %v641_v2, 0.7853982 }
  0xa9   : > { %v2552_v1 = vadd.s32 4294967169, %v645_v0  ;;  %v649_v14 = vor.u32 8388608, %v648_v6 }
  0xab   : > { %v651_v3 = vadd.s32 1, %v2552_v1  ;;  %v689_v33 = vshll.u32 %v649_v14, 8 }
  0xad   : > { %vm652_vm7 = vcmp.gt.s32.totalorder %v651_v3, 0 }
  0xae   : > { %v653_v5 = vsel %vm652_vm7, %v651_v3, 0 }
  0xaf   : > { %v655_v7 = vand.u32 31, %v653_v5  ;;  %v654_v8 = vshrl.u32 %v653_v5, 5 }
  0xb1   : > { %v656_v9 = vsub.s32 32, %v655_v7  ;;  %v667_v11 = vshll.u32 %v2762_v10, %v655_v7  ;;  %v670_v13 = vshll.u32 %v2763_v12, %v655_v7  ;;  %v658_v16 = vshll.u32 %v2764_v15, %v655_v7 }
  0xb2   : > { %v661_v18 = vshll.u32 %v2765_v17, %v655_v7  ;;  %v664_v20 = vshll.u32 %v2766_v19, %v655_v7  ;;  %vm676_vm8 = vcmp.lt.s32.totalorder %v654_v8, 4  ;;  %vm673_vm9 = vcmp.lt.s32.totalorder %v654_v8, 1 }
  0xb3   : > { %v668_v21 = vshrl.u32 %v2763_v12, %v656_v9  ;;  %v671_v23 = vshrl.u32 %v2767_v22, %v656_v9  ;;  %v657_v24 = vshrl.u32 %v2764_v15, %v656_v9  ;;  %v659_v25 = vshrl.u32 %v2765_v17, %v656_v9 }
  0xb4   : > { %v662_v26 = vshrl.u32 %v2766_v19, %v656_v9  ;;  %v665_v27 = vshrl.u32 %v2762_v10, %v656_v9  ;;  %vm675_vm10 = vcmp.lt.s32.totalorder %v654_v8, 3  ;;  %vm674_vm11 = vcmp.lt.s32.totalorder %v654_v8, 2 }
  0xb5   : > { %v669_v28 = vor.u32 %v668_v21, %v667_v11  ;;  %v672_v29 = vor.u32 %v671_v23, %v670_v13  ;;  %v660_v30 = vor.u32 %v659_v25, %v658_v16 }
  0xb6   : > { %v663_v31 = vor.u32 %v662_v26, %v661_v18  ;;  %v666_v32 = vor.u32 %v665_v27, %v664_v20 }
  0xb7   : > { %v682_v34 = vsel %vm676_vm8, %v669_v28, 920167782  ;;  %v686_v35 = vsel %vm676_vm8, %v672_v29, 1326507024  ;;  %v677_v36 = vsel %vm673_vm9, %v657_v24, %v660_v30 }
  0xb8   : > { %v678_v37 = vsel %vm676_vm8, %v666_v32, 2102212464  ;;  %v681_v38 = vsel %vm673_vm9, %v660_v30, %v663_v31  ;;  %v683_v39 = vsel %vm675_vm10, %v666_v32, %v682_v34  ;;  %v685_v40 = vsel %vm673_vm9, %v663_v31, %v666_v32 }
  0xb9   : > { %v679_v45 = vsel %vm675_vm10, %v663_v31, %v678_v37  ;;  %v684_v52 = vsel %vm674_vm11, %v681_v38, %v683_v39  ;;  %v687_v55 = vsel %vm675_vm10, %v669_v28, %v686_v35  ;;  %vm2145_vm9 = vcmask 130048  }
  0xba   : > { %v680_v56 = vsel %vm674_vm11, %v677_v36, %v679_v45  ;;  %v688_v57 = vsel %vm674_vm11, %v685_v40, %v687_v55  ;;  %v3004_v58 = vmul.u32.u64.low %v689_v33, %v684_v52  ;;  %v3005_v59 = vmul.u32.u64.high %v689_v33, %v684_v52, %v3004_v58 }
  0xbb   : > { %v3007_v60 = vmul.u32.u64.low %v689_v33, %v688_v57  ;;  %v3008_v61 = vmul.u32.u64.high %v689_v33, %v688_v57, %v3007_v60  ;;  %v696_v63 = vmul.u32 %v689_v33, %v680_v56 }
  0xbc   : > { %v699_v0 = vadd.s32 1, %v3005_v59 }
  0xbd   : > { %vm698_vm12 = vc.u32 %v3008_v61, %v3004_v58  ;;  %v697_v13 = vadd.s32 %v3004_v58, %v3008_v61 }
  0xbe   : > { %v700_v1 = vsel %vm698_vm12, %v699_v0, %v3005_v59 }
  0xbf   : > { %v701_v3 = vadd.s32 %v700_v1, %v696_v63 }
  0xc1   : > { %v702_v5 = vadd.s32 536870912, %v701_v3 }
  0xc3   : > { %v703_v6 = vshrl.u32 %v702_v5, 30 }
  0xc5   : > { %v704_v7 = vshll.u32 %v703_v6, 30  ;;  %v727_v26 = vsub.s32 4, %v703_v6 }
  0xc7   : > { %v705_v8 = vsub.s32 %v701_v3, %v704_v7  ;;  %v728_v31 = vsel %vm643_vm14, %v727_v26, %v703_v6 }
  0xc8   : > { %v730_v38 = vsel %vm642_vm15, 0, %v728_v31 }
  0xc9   : > { %v707_v9 = vsub.s32 0, %v705_v8  ;;  %v734_v52 = vadd.s32 3, %v730_v38  ;;  %v3038_v0 = vand.u32 3, %v730_v38 }
  0xcb   : > { %v2553_v10 = vmin.u32 %v707_v9, %v705_v8  ;;  %v3043_v7 = vand.u32 3, %v734_v52  ;;  %vm840_vm2 = vcmp.eq.s32.totalorder %v3038_v0, 0  ;;  %vm843_vm3 = vcmp.eq.s32.totalorder %v3038_v0, 2 }
  0xcc   : > { %vm839_vm4 = vcmp.lt.s32.totalorder %v3038_v0, 2 }
  0xcd   : > { %v709_v11 = vclz %v2553_v10  ;;  %vm737_vm6 = vcmp.eq.s32.totalorder %v3043_v7, 0  ;;  %vm740_vm7 = vcmp.eq.s32.totalorder %v3043_v7, 2  ;;  %vm736_vm8 = vcmp.lt.s32.totalorder %v3043_v7, 2 }
  0xcf   : > { %v2554_v12 = vadd.s32 4294967294, %v709_v11 }
  0xd1   : > { %vm2555_vm13 = vcmp.lt.s32.totalorder %v2554_v12, 0 }
  0xd2   : > { %v712_v14 = vsel %vm2555_vm13, 0, %v2554_v12 }
  0xd3   : > { %v713_v15 = vsub.s32 32, %v712_v14  ;;  %v714_v16 = vshll.u32 %v705_v8, %v712_v14  ;;  %v717_v17 = vsub.s32 4294967266, %v712_v14 }
  0xd5   : > { %v715_v18 = vshrl.u32 %v697_v13, %v713_v15  ;;  %v718_v19 = vadd.s32 127, %v717_v17 }
  0xd7   : > { %v716_v20 = vor.u32 %v715_v18, %v714_v16  ;;  %v719_v21 = vshll.u32 %v718_v19, 23 }
  0xd9   : > { %v720_v22 = vor.u32 4788187, %v719_v21  ;;  %v723_v23 = vcvt.s32.f32 %v716_v20 }
  0xdb   : > { %v721_v24 = vand.u32 2147483647, %v720_v22 }
  0xdd   : > { %v724_v25 = vmul.f32 %v723_v23, %v721_v24 }
  0xdf   : > { %v725_v28 = vxor.u32 2147483648, %v724_v25 }
  0xe1   : > { %v726_v37 = vsel %vm643_vm14, %v725_v28, %v724_v25 }
  0xe2   : > { %v729_v58 = vsel %vm642_vm15, %v2998_v62, %v726_v37 }
  0xe3   : > { %2687 = vcosq.f32 %v729_v58 }
  0xe4   : > { %2689 = vsinq.f32 %v729_v58 }
  0xe7   : > { %v1051_v27 = vpop.f32.mrb[0].mxu0 }
  0xe8   : > { %v3016_v29 = vadd.f32 %v1051_v27, %v2969_v41  ;;  %v1053_v30 = vpop.f32.mrb[1].mxu0 }
  0xe9   : > { %v3019_v32 = vadd.f32 %v1053_v30, %v2969_v41 }
  0xea   : > { %v1056_v33 = vsel %vm978_vm0, %v3016_v29, 0.0 }
  0xeb   : > { %v1057_v34 = vrot.slane %v1056_v33, 4  ;;  %v1063_v35 = vsel %vm978_vm0, %v3019_v32, 0.0  ;;  %v1286_v36 = vpop.f32.mrb[2].mxu0 }
  0xec   : > { %v1064_v39 = vrot.slane %v1063_v35, 4  ;;  %v3028_v40 = vadd.f32 %v1286_v36, %v2969_v41  ;;  %v1288_v45 = vpop.f32.mrb[3].mxu0 }
  0xed   : > { %v1058_v55 = vadd.f32 %v1057_v34, %v1056_v33  ;;  %v3031_v56 = vadd.f32 %v1288_v45, %v2969_v41 }
  0xee   : > { %v1065_v57 = vadd.f32 %v1064_v39, %v1063_v35  ;;  %v1291_v2 = vsel %vm978_vm0, %v3028_v40, 0.0 }
  0xef   : > { %v1059_v59 = vrot.slane %v1058_v55, 2  ;;  %v1292_v60 = vrot.slane %v1291_v2, 4  ;;  %v1298_v61 = vsel %vm978_vm0, %v3031_v56, 0.0  ;;  %v1520_v63 = vpop.f32.mrb[4].mxu0 }
  0xf0   : > { %v1066_v1 = vrot.slane %v1065_v57, 2  ;;  %v1299_v3 = vrot.slane %v1298_v61, 4  ;;  %v3041_v5 = vadd.f32 %v1520_v63, %v2969_v41  ;;  %v1522_v6 = vpop.f32.mrb[5].mxu0  ;;  %v3068_v63 = vpop.eup %2687 }
  0xf1   : > { %v1060_v8 = vadd.f32 %v1059_v59, %v1058_v55  ;;  %v1293_v9 = vadd.f32 %v1292_v60, %v1291_v2  ;;  %v3046_v10 = vadd.f32 %v1522_v6, %v2969_v41 }
  0xf2   : > { %v1067_v11 = vadd.f32 %v1066_v1, %v1065_v57  ;;  %v1300_v12 = vadd.f32 %v1299_v3, %v1298_v61  ;;  %v1525_v13 = vsel %vm978_vm0, %v3041_v5, 0.0 }
  0xf3   : > { %v1061_v14 = vrot.slane %v1060_v8, 1  ;;  %v1294_v15 = vrot.slane %v1293_v9, 2  ;;  %v1526_v16 = vrot.slane %v1525_v13, 4  ;;  %v1532_v17 = vsel %vm978_vm0, %v3046_v10, 0.0  ;;  %v1754_v18 = vpop.f32.mrb[6].mxu0 }
  0xf4   : > { %v1068_v19 = vrot.slane %v1067_v11, 1  ;;  %v1301_v20 = vrot.slane %v1300_v12, 2  ;;  %v1533_v21 = vrot.slane %v1532_v17, 4  ;;  %v3053_v22 = vadd.f32 %v1754_v18, %v2969_v41  ;;  %v1756_v23 = vpop.f32.mrb[7].mxu0 }
  0xf5   : > { %v1062_v24 = vadd.f32 %v1061_v14, %v1060_v8  ;;  %v1295_v25 = vadd.f32 %v1294_v15, %v1293_v9  ;;  %v1527_v26 = vadd.f32 %v1526_v16, %v1525_v13  ;;  %v3056_v27 = vadd.f32 %v1756_v23, %v2969_v41  ;;  %v3072_v9 = vpop.eup %2689 }
  0xf6   : > { %v1069_v28 = vadd.f32 %v1068_v19, %v1067_v11  ;;  %v1302_v30 = vadd.f32 %v1301_v20, %v1300_v12  ;;  %v1534_v31 = vadd.f32 %v1533_v21, %v1532_v17  ;;  %v1759_v33 = vsel %vm978_vm0, %v3053_v22, 0.0 }
  0xf7   : > { %v1071_v34 = vmul.f32 0.25, %v1062_v24  ;;  %v1296_v35 = vrot.slane %v1295_v25, 1  ;;  %v1528_v36 = vrot.slane %v1527_v26, 2  ;;  %v1760_v37 = vrot.slane %v1759_v33, 4 }
  0xf8   : > { %v1072_v38 = vmul.f32 0.25, %v1069_v28  ;;  %v1303_v39 = vrot.slane %v1302_v30, 1  ;;  %v1535_v45 = vrot.slane %v1534_v31, 2  ;;  %v1766_v52 = vsel %vm978_vm0, %v3056_v27, 0.0 }
  0xf9   : > { %v3063_v55 = vsub.f32 %v3016_v29, %v1071_v34  ;;  %v1297_v41 = vadd.f32 %v1296_v35, %v1295_v25  ;;  %v1529_v57 = vadd.f32 %v1528_v36, %v1527_v26  ;;  %v1761_v2 = vadd.f32 %v1760_v37, %v1759_v33 }
  0xfa   : > { %v3066_v58 = vsub.f32 %v3019_v32, %v1072_v38  ;;  %v1304_v59 = vadd.f32 %v1303_v39, %v1302_v30  ;;  %v1536_v60 = vadd.f32 %v1535_v45, %v1534_v31  ;;  %v1767_v61 = vrot.slane %v1766_v52, 4 }
  0xfb   : > { %v1075_v1 = vmul.f32 %v3063_v55, %v3063_v55  ;;  %v1305_v3 = vmul.f32 0.25, %v1297_v41  ;;  %v1530_v6 = vrot.slane %v1529_v57, 1  ;;  %v1762_v8 = vrot.slane %v1761_v2, 2 }
  0xfc   : > { %v1076_v29 = vmul.f32 %v3066_v58, %v3066_v58  ;;  %v1306_v11 = vmul.f32 0.25, %v1304_v59  ;;  %v1537_v12 = vrot.slane %v1536_v60, 1  ;;  %v1768_v32 = vadd.f32 %v1767_v61, %v1766_v52 }
  0xfd   : > { %v1077_v13 = vsel %vm978_vm0, %v1075_v1, 0.0  ;;  %v3078_v14 = vsub.f32 %v3028_v40, %v1305_v3  ;;  %v1531_v15 = vadd.f32 %v1530_v6, %v1529_v57  ;;  %v1763_v16 = vadd.f32 %v1762_v8, %v1761_v2 }
  0xfe   : > { %v1078_v17 = vrot.slane %v1077_v13, 4  ;;  %v1084_v18 = vsel %vm978_vm0, %v1076_v29, 0.0  ;;  %v3082_v19 = vsub.f32 %v3031_v56, %v1306_v11  ;;  %v1538_v20 = vadd.f32 %v1537_v12, %v1536_v60 }
  0xff   : > { %v1085_v21 = vrot.slane %v1084_v18, 4  ;;  %v1309_v23 = vmul.f32 %v3078_v14, %v3078_v14  ;;  %v1539_v24 = vmul.f32 0.25, %v1531_v15  ;;  %v1764_v25 = vrot.slane %v1763_v16, 1 }
 0x100   : > { %v1079_v26 = vadd.f32 %v1078_v17, %v1077_v13  ;;  %v1310_v40 = vmul.f32 %v3082_v19, %v3082_v19  ;;  %v1540_v28 = vmul.f32 0.25, %v1538_v20  ;;  %v1769_v30 = vrot.slane %v1768_v32, 2 }
 0x101   : > { %v1086_v31 = vadd.f32 %v1085_v21, %v1084_v18  ;;  %v1311_v33 = vsel %vm978_vm0, %v1309_v23, 0.0  ;;  %v3090_v34 = vsub.f32 %v3041_v5, %v1539_v24  ;;  %v1765_v56 = vadd.f32 %v1764_v25, %v1763_v16 }
 0x102   : > { %v1080_v35 = vrot.slane %v1079_v26, 2  ;;  %v1312_v36 = vrot.slane %v1311_v33, 4  ;;  %v1318_v37 = vsel %vm978_vm0, %v1310_v40, 0.0  ;;  %v3094_v38 = vsub.f32 %v3046_v10, %v1540_v28 }
 0x103   : > { %v1087_v39 = vrot.slane %v1086_v31, 2  ;;  %v1319_v45 = vrot.slane %v1318_v37, 4  ;;  %v1543_v52 = vmul.f32 %v3090_v34, %v3090_v34  ;;  %v1773_v41 = vmul.f32 0.25, %v1765_v56 }
 0x104   : > { %v1081_v57 = vadd.f32 %v1080_v35, %v1079_v26  ;;  %v1313_v2 = vadd.f32 %v1312_v36, %v1311_v33  ;;  %v1544_v5 = vmul.f32 %v3094_v38, %v3094_v38  ;;  %v1770_v59 = vadd.f32 %v1769_v30, %v1768_v32 }
 0x105   : > { %v1088_v60 = vadd.f32 %v1087_v39, %v1086_v31  ;;  %v1320_v61 = vadd.f32 %v1319_v45, %v1318_v37  ;;  %v1545_v1 = vsel %vm978_vm0, %v1543_v52, 0.0  ;;  %v3102_v3 = vsub.f32 %v3053_v22, %v1773_v41 }
 0x106   : > { %v1082_v10 = vrot.slane %v1081_v57, 1  ;;  %v1314_v6 = vrot.slane %v1313_v2, 2  ;;  %v1546_v8 = vrot.slane %v1545_v1, 4  ;;  %v1552_v29 = vsel %vm978_vm0, %v1544_v5, 0.0 }
 0x107   : > { %v1089_v11 = vrot.slane %v1088_v60, 1  ;;  %v1321_v12 = vrot.slane %v1320_v61, 2  ;;  %v1553_v13 = vrot.slane %v1552_v29, 4  ;;  %v1777_v15 = vmul.f32 %v3102_v3, %v3102_v3 }
 0x108   : > { %v1083_v32 = vadd.f32 %v1082_v10, %v1081_v57  ;;  %v1315_v16 = vadd.f32 %v1314_v6, %v1313_v2  ;;  %v1547_v17 = vadd.f32 %v1546_v8, %v1545_v1  ;;  %v1771_v18 = vrot.slane %v1770_v59, 1 }
 0x109   : > { %v1090_v22 = vadd.f32 %v1089_v11, %v1088_v60  ;;  %v1322_v20 = vadd.f32 %v1321_v12, %v1320_v61  ;;  %v1554_v21 = vadd.f32 %v1553_v13, %v1552_v29  ;;  %v1779_v23 = vsel %vm978_vm0, %v1777_v15, 0.0 }
 0x10a   : > { %v1091_v24 = vmul.f32 0.25, %v1083_v32  ;;  %v1316_v25 = vrot.slane %v1315_v16, 1  ;;  %v1548_v26 = vrot.slane %v1547_v17, 2  ;;  %v1780_v40 = vrot.slane %v1779_v23, 4 }
 0x10b   : > { %v1092_v28 = vmul.f32 0.25, %v1090_v22  ;;  %v1323_v30 = vrot.slane %v1322_v20, 1  ;;  %v1555_v31 = vrot.slane %v1554_v21, 2  ;;  %v1772_v33 = vadd.f32 %v1771_v18, %v1770_v59 }
 0x10c   : > { %v1093_v56 = vadd.f32 1e-06, %v1091_v24  ;;  %v1317_v35 = vadd.f32 %v1316_v25, %v1315_v16  ;;  %v1549_v36 = vadd.f32 %v1548_v26, %v1547_v17  ;;  %v1781_v37 = vadd.f32 %v1780_v40, %v1779_v23 }
 0x10d   : > { %v1094_v39 = vadd.f32 1e-06, %v1092_v28  ;;  %v1324_v45 = vadd.f32 %v1323_v30, %v1322_v20  ;;  %v1556_v52 = vadd.f32 %v1555_v31, %v1554_v21  ;;  %v1774_v41 = vmul.f32 0.25, %v1772_v33 }
 0x10e   : > { %2691 = vrsqrt.f32 %v1093_v56  ;;  %v1325_v57 = vmul.f32 0.25, %v1317_v35  ;;  %v1550_v2 = vrot.slane %v1549_v36, 1  ;;  %v1782_v5 = vrot.slane %v1781_v37, 2 }
 0x10f   : > { %2693 = vrsqrt.f32 %v1094_v39  ;;  %v1326_v60 = vmul.f32 0.25, %v1324_v45  ;;  %v1557_v61 = vrot.slane %v1556_v52, 1  ;;  %v3116_v1 = vsub.f32 %v3056_v27, %v1774_v41 }
 0x110   : > { %v1327_v59 = vadd.f32 1e-06, %v1325_v57  ;;  %v1551_v10 = vadd.f32 %v1550_v2, %v1549_v36  ;;  %v1783_v6 = vadd.f32 %v1782_v5, %v1781_v37  ;;  %v738_v8 = vxor.u32 2147483648, %v3072_v9 }
 0x111   : > { %v1328_v29 = vadd.f32 1e-06, %v1326_v60  ;;  %v1558_v11 = vadd.f32 %v1557_v61, %v1556_v52  ;;  %v1778_v12 = vmul.f32 %v3116_v1, %v3116_v1  ;;  %v741_v13 = vxor.u32 2147483648, %v3068_v63 }
 0x112   : > { %2695 = vrsqrt.f32 %v1327_v59  ;;  %v1559_v15 = vmul.f32 0.25, %v1551_v10  ;;  %v1784_v32 = vrot.slane %v1783_v6, 1  ;;  %v842_v27 = vsel %vm840_vm2, %v3068_v63, %v738_v8 }
 0x113   : > { %2697 = vrsqrt.f32 %v1328_v29  ;;  %v1560_v16 = vmul.f32 0.25, %v1558_v11  ;;  %v1786_v17 = vsel %vm978_vm0, %v1778_v12, 0.0  ;;  %v845_v18 = vsel %vm843_vm3, %v741_v13, %v3072_v9 }
 0x114   : > { %v1561_v22 = vadd.f32 1e-06, %v1559_v15  ;;  %v1785_v20 = vadd.f32 %v1784_v32, %v1783_v6  ;;  %v1787_v21 = vrot.slane %v1786_v17, 4  ;;  %v846_v23 = vsel %vm839_vm4, %v842_v27, %v845_v18 }
 0x115   : > { %v1562_v24 = vadd.f32 1e-06, %v1560_v16  ;;  %v847_v25 = vsel %vm733_vm5, nan, %v846_v23  ;;  %v739_v26 = vsel %vm737_vm6, %v3068_v63, %v738_v8  ;;  %v742_v40 = vsel %vm740_vm7, %v741_v13, %v3072_v9  ;;  %v2064_v63 = vld [vmem:[%s3495_s14 + $0x78] sm:$0xff] }
 0x116   : > { %2699 = vrsqrt.f32 %v1561_v22  ;;  %v1793_v28 = vmul.f32 0.25, %v1785_v20  ;;  %v1788_v30 = vadd.f32 %v1787_v21, %v1786_v17  ;;  %849 = vrot.lane.b32.xlu1 %v847_v25, %s2768_s18  ;;  %v743_v0 = vsel %vm736_vm8, %v739_v26, %v742_v40  ;;  %s3420_s18 = scalar_lea.vmem %s3497_s16, %s2612_s29 }
 0x117   : > { %2701 = vrsqrt.f32 %v1562_v24  ;;  %v3143_v31 = vsel %vm733_vm5, nan, %v743_v0 }
 0x118   : > { %v2692_v33 = vpop.eup %2691  ;;  %v1795_v56 = vadd.f32 1e-06, %v1793_v28  ;;  %v1789_v9 = vrot.slane %v1788_v30, 2 }
 0x119   : > { %v2694_v35 = vpop.eup %2693  ;;  %v1097_v36 = vmul.f32 %v2692_v33, %v3063_v55 }
 0x11a   : > { %v1098_v37 = vmul.f32 %v2694_v35, %v3066_v58  ;;  %2703 = vrsqrt.f32 %v1795_v56  ;;  %v1790_v7 = vadd.f32 %v1789_v9, %v1788_v30  ;;  %2142 = vperm.xlu1 %2674, %v2064_v63  }
 0x11b   : > { %v1099_v39 = vmul.f32 %v1097_v36, %v2973_v43 }
 0x11c   : > { %v2696_v62 = vpop.eup %2695  ;;  %v1100_v45 = vmul.f32 %v1098_v37, %v2973_v43  ;;  %v1791_v52 = vrot.slane %v1790_v7, 1 }
 0x11d   : > { %v2698_v41 = vpop.eup %2697  ;;  %v3153_v57 = vadd.f32 %v1099_v39, %v2971_v42  ;;  %v1331_v2 = vmul.f32 %v2696_v62, %v3078_v14 }
 0x11e   : > { %v3157_v5 = vadd.f32 %v1100_v45, %v2971_v42  ;;  %v1332_v55 = vmul.f32 %v2698_v41, %v3082_v19  ;;  %v1792_v58 = vadd.f32 %v1791_v52, %v1790_v7 }
 0x11f   : > { %v1333_v60 = vmul.f32 %v1331_v2, %v2973_v43  ;;  %v1105_v61 = vmul.f32 %v3153_v57, %v3153_v57 }
 0x120   : > { %v2700_v59 = vpop.eup %2699  ;;  %v1334_v10 = vmul.f32 %v1332_v55, %v2973_v43  ;;  %v1794_v6 = vmul.f32 0.25, %v1792_v58  ;;  %v1106_v8 = vmul.f32 %v3157_v5, %v3157_v5 }
 0x121   : > { %v2702_v29 = vpop.eup %2701  ;;  %v3167_v14 = vadd.f32 %v1333_v60, %v2971_v42  ;;  %v1565_v11 = vmul.f32 %v2700_v59, %v3090_v34  ;;  %v1107_v19 = vmul.f32 %v1105_v61, %v3153_v57 }
 0x122   : > { %v3172_v12 = vadd.f32 %v1334_v10, %v2971_v42  ;;  %v1566_v13 = vmul.f32 %v2702_v29, %v3094_v38  ;;  %v1796_v15 = vadd.f32 1e-06, %v1794_v6  ;;  %v1108_v32 = vmul.f32 %v1106_v8, %v3157_v5 }
 0x123   : > { %v1339_v27 = vmul.f32 %v3167_v14, %v3167_v14  ;;  %v1567_v16 = vmul.f32 %v1565_v11, %v2973_v43  ;;  %v1109_v17 = vmul.f32 0.044715, %v1107_v19 }
 0x124   : > { %v2704_v18 = vpop.eup %2703  ;;  %v1340_v34 = vmul.f32 %v3172_v12, %v3172_v12  ;;  %v1568_v22 = vmul.f32 %v1566_v13, %v2973_v43  ;;  %2705 = vrsqrt.f32 %v1796_v15  ;;  %v1110_v20 = vmul.f32 0.044715, %v1108_v32 }
 0x125   : > { %v1341_v21 = vmul.f32 %v1339_v27, %v3167_v14  ;;  %v3184_v38 = vadd.f32 %v1567_v16, %v2971_v42  ;;  %v1799_v23 = vmul.f32 %v2704_v18, %v3102_v3  ;;  %v1111_v24 = vadd.f32 %v1109_v17, %v3153_v57 }
 0x126   : > { %v3189_v25 = vadd.f32 %v1568_v22, %v2971_v42  ;;  %v1112_v26 = vadd.f32 %v1110_v20, %v3157_v5  ;;  %v1342_v40 = vmul.f32 %v1340_v34, %v3172_v12  ;;  %v1104_v27 = vmul.f32 0.5, %v3157_v5 }
 0x127   : > { %v1343_v28 = vmul.f32 0.044715, %v1341_v21  ;;  %v1573_v30 = vmul.f32 %v3184_v38, %v3184_v38  ;;  %v1801_v0 = vmul.f32 %v1799_v23, %v2973_v43  ;;  %v1113_v63 = vmul.f32 0.7978846, %v1111_v24 }
 0x128   : > { %v1574_v33 = vmul.f32 %v3189_v25, %v3189_v25  ;;  %v1114_v3 = vmul.f32 0.7978846, %v1112_v26  ;;  %v1344_v56 = vmul.f32 0.044715, %v1342_v40  ;;  %v1103_v17 = vmul.f32 0.5, %v3153_v57 }
 0x129   : > { %v1345_v9 = vadd.f32 %v1343_v28, %v3167_v14  ;;  %v1575_v35 = vmul.f32 %v1573_v30, %v3184_v38  ;;  %v3201_v36 = vadd.f32 %v1801_v0, %v2971_v42  ;;  %2707 = vtanh.f32 %v1113_v63  ;;  %v937_v63 = vld [vmem:[%s3490_s9 + $0x8] sm:$0xff] }
 0x12a   : > { %2709 = vtanh.f32 %v1114_v3  ;;  %v1346_v37 = vadd.f32 %v1344_v56, %v3172_v12  ;;  %v1576_v7 = vmul.f32 %v1574_v33, %v3189_v25  ;;  %v1338_v23 = vmul.f32 0.5, %v3172_v12 }
 0x12b   : > { %v1347_v39 = vmul.f32 0.7978846, %v1345_v9  ;;  %v1577_v62 = vmul.f32 0.044715, %v1575_v35  ;;  %v1807_v45 = vmul.f32 %v3201_v36, %v3201_v36  ;;  %v1337_v57 = vmul.f32 0.5, %v3167_v14  ;;  %v938_v9 = vld [vmem:[%s3490_s9 + $0x10] sm:$0xff] }
 0x12c   : > { %v1348_v52 = vmul.f32 0.7978846, %v1346_v37  ;;  %v1578_v41 = vmul.f32 0.044715, %v1576_v7  ;;  %v1572_v12 = vmul.f32 0.5, %v3189_v25  ;;  %v1571_v35 = vmul.f32 0.5, %v3184_v38 }
 0x12d   : > { %v1579_v2 = vadd.f32 %v1577_v62, %v3184_v38  ;;  %v1809_v55 = vmul.f32 %v1807_v45, %v3201_v36  ;;  %2711 = vtanh.f32 %v1347_v39  ;;  %v939_v37 = vld [vmem:[%s3490_s9 + $0x18] sm:$0xff]  ;;  %v940_v38 = vld [vmem:[%s3490_s9 + $0x20] sm:$0xff] }
 0x12e   : > { %v2706_v58 = vpop.eup %2705  ;;  %2713 = vtanh.f32 %v1348_v52  ;;  %v1580_v60 = vadd.f32 %v1578_v41, %v3189_v25  ;;  %v1805_v41 = vmul.f32 0.5, %v3201_v36 }
 0x12f   : > { %v1581_v61 = vmul.f32 0.7978846, %v1579_v2  ;;  %v1800_v59 = vmul.f32 %v2706_v58, %v3116_v1  ;;  %v1811_v10 = vmul.f32 0.044715, %v1809_v55  ;;  %v941_v58 = vld [vmem:[%s3490_s9 + $0x28] sm:$0xff] }
 0x130   : > { %v1582_v6 = vmul.f32 0.7978846, %v1580_v60  ;;  %v858_v60 = vpop.permute.xlu1 %857 }
 0x131   : > { %v1802_v8 = vmul.f32 %v1800_v59, %v2973_v43  ;;  %2715 = vtanh.f32 %v1581_v61  ;;  %v1813_v13 = vadd.f32 %v1811_v10, %v3201_v36  ;;  %v942_v36 = vld [vmem:[%s3490_s9 + $0x30] sm:$0xff]  ;;  %v943_v59 = vld [vmem:[%s3490_s9 + $0x38] sm:$0xff] }
 0x132   : > { %2717 = vtanh.f32 %v1582_v6 }
 0x133   : > { %v2708_v29 = vpop.eup %2707  ;;  %v1804_v11 = vadd.f32 %v1802_v8, %v2971_v42  ;;  %v1815_v43 = vmul.f32 0.7978846, %v1813_v13  ;;  %v936_v42 = vld [vmem:[%s3490_s9] sm:$0xff] }
 0x134   : > { %v2710_v19 = vpop.eup %2709  ;;  %v1117_v15 = vadd.f32 1.0, %v2708_v29  ;;  %v2684_v61 = vpop.permute.xlu1 %2683 }
 0x135   : > { %v1808_v32 = vmul.f32 %v1804_v11, %v1804_v11  ;;  %v1118_v16 = vadd.f32 1.0, %v2710_v19  ;;  %2719 = vtanh.f32 %v1815_v43  ;;  %v1806_v45 = vmul.f32 0.5, %v1804_v11 }
 0x136   : > { %v1119_v20 = vmul.f32 %v1117_v15, %v1103_v17  ;;  %v2679_v15 = vpop.permute.xlu0 %2678  ;;  %v898_v17 = vsub.s32 2, %v2979_v47 }
 0x137   : > { %v2712_v1 = vpop.eup %2711  ;;  %v1120_v18 = vmul.f32 %v1118_v16, %v1104_v27  ;;  %v1810_v34 = vmul.f32 %v1808_v32, %v1804_v11  ;;  %v861_v32 = vld [vmem:[%s3485_s4] sm:$0xff]  ;;  %v2680_v16 = vunpack.i.l.bf16 %v2679_v15 }
 0x138   : > { %v2714_v22 = vpop.eup %2713  ;;  %v1351_v21 = vadd.f32 1.0, %v2712_v1  ;;  %v922_v10 = vpop.permute.xlu1 %921  ;;  %v871_v27 = vrot.slane %v861_v32, %v627_v50  ;;  %v926_v50 = vsub.s32 4, %v2979_v47 }
 0x139   : > { %2568 = vmatprep.subr.msk.mxu1 %vm978_vm0, %v1120_v18  ;;  %v1352_v24 = vadd.f32 1.0, %v2714_v22  ;;  %v1812_v5 = vmul.f32 0.044715, %v1810_v34  ;;  %v885_v18 = vrot.slane %v861_v32, %v636_v53  ;;  %v2681_v34 = vunpack.i.h.bf16 %v2679_v15 }
 0x13a   : > { %2569 = vmatpush1.msk.msra.mxu1 %vm978_vm0, %v1119_v20  ;;  %v1353_v0 = vmul.f32 %v1351_v21, %v1337_v57  ;;  %v912_v22 = vsub.s32 3, %v2979_v47  ;;  %v872_v43 = vmul.f32 %v2680_v16, %v871_v27  ;;  %v899_v20 = vrot.slane %v861_v32, %v898_v17  ;;  %v2059_v16 = vld [vmem:[%s3495_s14 + $0x50] sm:$0xff] }
 0x13b   : > { %v2716_v26 = vpop.eup %2715  ;;  %2570 = vmatmul.mubr.msk.f32.vlgmr.msra.gmra.mrb[0].mxu1 %vm974_vm1, %v936_v42  ;;  %v1354_v40 = vmul.f32 %v1352_v24, %v1338_v23  ;;  %v1814_v28 = vadd.f32 %v1812_v5, %v1804_v11  ;;  %v2685_v21 = vunpack.i.l.bf16 %v2684_v61  ;;  %v886_v23 = vmul.f32 %v2681_v34, %v885_v18 }
 0x13c   : > { %v2718_v30 = vpop.eup %2717  ;;  %1203 = vmatprep.mubr.f32.mxu1 %v2760_v4  ;;  %v1585_v3 = vadd.f32 1.0, %v2716_v26  ;;  %v3269_v6 = vpop.permute.xlu1 %2072  ;;  %v913_v57 = vrot.slane %v861_v32, %v912_v22  ;;  %v2686_v26 = vunpack.i.h.bf16 %v2684_v61 }
 0x13d   : > { %2575 = vmatprep.subr.msk.mxu1 %vm978_vm0, %v1354_v40  ;;  %v1586_v33 = vadd.f32 1.0, %v2718_v30  ;;  %v1816_v14 = vmul.f32 0.7978846, %v1814_v28  ;;  %v900_v53 = vmul.f32 %v2685_v21, %v899_v20  ;;  %v927_v28 = vrot.slane %v861_v32, %v926_v50  ;;  %v2061_v21 = vld [vmem:[%s3495_s14 + $0x60] sm:$0xff] }
 0x13e   : > { %2576 = vmatpush1.msk.msra.mxu1 %vm978_vm0, %v1353_v0  ;;  %v1587_v25 = vmul.f32 %v1585_v3, %v1571_v35  ;;  %v914_v0 = vmul.f32 %v2686_v26, %v913_v57  ;;  %v2063_v26 = vld [vmem:[%s3495_s14 + $0x70] sm:$0xff] }
 0x13f   : > { %2571 = vmatmul.mubr.msk.f32.gmra.mrb[2].mxu1 %vm974_vm1, %v937_v63  ;;  %v1588_v56 = vmul.f32 %v1586_v33, %v1572_v12  ;;  %2721 = vtanh.f32 %v1816_v14  ;;  %v2720_v7 = vpop.eup %2719  ;;  %v928_v12 = vmul.f32 %v927_v28, %v922_v10 }
 0x140   : > { %1431 = vmatprep.mubr.f32.mxu1 %v2760_v4  ;;  %v1819_v62 = vadd.f32 1.0, %v2720_v7  ;;  %v3271_v8 = vpop.permute.xlu1 %2082 }
 0x141   : > { %2582 = vmatprep.subr.msk.mxu1 %vm978_vm0, %v1588_v56 }
 0x142   : > { %v1821_v55 = vmul.f32 %v1819_v62, %v1805_v41 }
 0x143   : > { %2577 = vmatmul.mubr.msk.f32.vlgmr.msra.gmra.mrb[0].mxu1 %vm974_vm1, %v938_v9 }
 0x144   : > { %2583 = vmatpush1.msk.msra.mxu1 %vm978_vm0, %v1587_v25  ;;  %1437 = vmatprep.mubr.f32.mxu1 %v2760_v4  ;;  %v3273_v29 = vpop.permute.xlu1 %2092 }
 0x147   : > { %2578 = vmatmul.mubr.msk.f32.gmra.mrb[2].mxu1 %vm974_vm1, %v939_v37  ;;  %v2051_v37 = vld [vmem:[%s3495_s14 + $0x10] sm:$0xff] }
 0x148   : > { %1665 = vmatprep.mubr.f32.mxu1 %v2760_v4  ;;  %v3275_v11 = vpop.permute.xlu1 %2102 }
 0x149   : > { %v2722_v39 = vpop.eup %2721 }
 0x14a   : > { %v1820_v52 = vadd.f32 1.0, %v2722_v39 }
 0x14b   : > { %2584 = vmatmul.mubr.msk.f32.vlgmr.msra.gmra.mrb[0].mxu1 %vm974_vm1, %v940_v38 }
 0x14c   : > { %v1822_v2 = vmul.f32 %v1820_v52, %v1806_v45  ;;  %1671 = vmatprep.mubr.f32.mxu1 %v2760_v4  ;;  %v3277_v19 = vpop.permute.xlu1 %2112  ;;  %v2053_v52 = vld [vmem:[%s3495_s14 + $0x20] sm:$0xff] }
 0x14e   : > { %2589 = vmatprep.subr.msk.mxu1 %vm978_vm0, %v1822_v2 }
 0x14f   : > { %2590 = vmatpush1.msk.msra.mxu1 %vm978_vm0, %v1821_v55  ;;  %vm852_vm0 = vcmask 523264  }
 0x150   : > { %2585 = vmatmul.mubr.msk.f32.gmra.mrb[2].mxu1 %vm974_vm1, %v941_v58  ;;  %v3279_v13 = vpop.permute.xlu1 %2122 }
 0x151   : > { %1899 = vmatprep.mubr.f32.mxu1 %v2760_v4 }
 0x154   : > { %2591 = vmatmul.mubr.msk.f32.vlgmr.msra.gmra.mrb[0].mxu1 %vm974_vm1, %v942_v36  ;;  %v3287_v1 = vpop.permute.xlu1 %2132 }
 0x155   : > { %1905 = vmatprep.mubr.f32.mxu1 %v2760_v4 }
 0x158   : > { %2592 = vmatmul.mubr.msk.f32.gmra.mrb[2].mxu1 %vm974_vm1, %v943_v59  ;;  %vm859_vm1 = vcmp.eq.s32.totalorder %v858_v60, 1  ;;  %v2055_v60 = vld [vmem:[%s3495_s14 + $0x30] sm:$0xff]  ;;  %v2057_v59 = vld [vmem:[%s3495_s14 + $0x40] sm:$0xff] }
 0x159   : > { %2318 = vmatprep.mubr.f32.mxu1 %v2760_v4 }
 0x188   : > { %v850_v42 = vpop.permute.xlu1 %849 }
 0x189   : > { %v853_v24 = vsel %vm852_vm0, %v3143_v31, %v850_v42  ;;  %v2049_v31 = vld [vmem:[%s3495_s14] sm:$0xff] }
 0x18a   : > { %v860_v5 = vsel %vm859_vm1, 0.0, %v853_v24  ;;  %2067 = vperm.xlu0 %2676, %v2049_v31  }
 0x18b   : > { %v873_v40 = vadd.f32 %v872_v43, %v860_v5 }
 0x18d   : > { %v887_v30 = vadd.f32 %v886_v23, %v873_v40 }
 0x18e   : > { %2077 = vperm.xlu0 %2676, %v2051_v37  }
 0x18f   : > { %v901_v63 = vadd.f32 %v900_v53, %v887_v30 }
 0x191   : > { %v915_v33 = vadd.f32 %v914_v0, %v901_v63 }
 0x192   : > { %2087 = vperm.xlu0 %2676, %v2053_v52  }
 0x193   : > { %v929_v14 = vadd.f32 %v928_v12, %v915_v33 }
 0x195   : > { %930 = vst [vmem:[%s603_s20] sm:$0xff] %v929_v14 }
 0x196   : > { %2097 = vperm.xlu0 %2676, %v2055_v60  }
 0x19a   : > { %2107 = vperm.xlu0 %2676, %v2057_v59  }
 0x19e   : > { %2117 = vperm.xlu0 %2676, %v2059_v16  }
 0x1a2   : > { %2127 = vperm.xlu0 %2676, %v2061_v21  }
 0x1a6   : > { %2137 = vperm.xlu0 %2676, %v2063_v26  }
 0x227   : > { %v1901_v47 = vpop.f32.mrb[0].mxu1 }
 0x228   : > { %v1903_v3 = vpop.f32.mrb[1].mxu1  ;;  %v2619_v9 = vadd.f32 %v1901_v47, %v2975_v44 }
 0x229   : > { %v2620_v7 = vadd.f32 %v1903_v3, %v2975_v44 }
 0x22b   : > { %v1907_v56 = vpop.f32.mrb[2].mxu1 }
 0x22c   : > { %v2621_v35 = vadd.f32 %v1907_v56, %v2977_v46  ;;  %v1909_v25 = vpop.f32.mrb[3].mxu1 }
 0x22d   : > { %v2622_v38 = vadd.f32 %v1909_v25, %v2977_v46 }
 0x22e   : > { %v1940_v39 = vadd.f32 %v2621_v35, %v2619_v9 }
 0x22f   : > { %v1947_v62 = vadd.f32 %v2622_v38, %v2620_v7 }
 0x230   : > { %v1941_v45 = vrot.slane %v1940_v39, 4 }
 0x231   : > { %v1948_v41 = vrot.slane %v1947_v62, 4 }
 0x232   : > { %v1942_v2 = vadd.f32 %v1941_v45, %v1940_v39 }
 0x233   : > { %v1949_v55 = vadd.f32 %v1948_v41, %v1947_v62 }
 0x234   : > { %v1943_v58 = vrot.slane %v1942_v2, 2 }
 0x235   : > { %v1950_v44 = vrot.slane %v1949_v55, 2 }
 0x236   : > { %v1944_v36 = vadd.f32 %v1943_v58, %v1942_v2 }
 0x237   : > { %v1951_v46 = vadd.f32 %v1950_v44, %v1949_v55 }
 0x238   : > { %v1945_v61 = vrot.slane %v1944_v36, 1 }
 0x239   : > { %v1952_v10 = vrot.slane %v1951_v46, 1 }
 0x23a   : > { %v1946_v15 = vadd.f32 %v1945_v61, %v1944_v36 }
 0x23b   : > { %v1953_v32 = vadd.f32 %v1952_v10, %v1951_v46 }
 0x23c   : > { %v1955_v27 = vmul.f32 0.0625, %v1946_v15 }
 0x23d   : > { %v1956_v17 = vmul.f32 0.0625, %v1953_v32 }
 0x23e   : > { %v1957_v18 = vsub.f32 %v2619_v9, %v1955_v27  ;;  %v1959_v34 = vsub.f32 %v2621_v35, %v1955_v27 }
 0x23f   : > { %v1958_v22 = vsub.f32 %v2620_v7, %v1956_v17  ;;  %v1960_v43 = vsub.f32 %v2622_v38, %v1956_v17 }
 0x240   : > { %v1961_v20 = vmul.f32 %v1957_v18, %v1957_v18  ;;  %v1963_v42 = vmul.f32 %v1959_v34, %v1959_v34 }
 0x241   : > { %v1962_v50 = vmul.f32 %v1958_v22, %v1958_v22  ;;  %v1964_v23 = vmul.f32 %v1960_v43, %v1960_v43 }
 0x242   : > { %v1965_v24 = vadd.f32 %v1963_v42, %v1961_v20 }
 0x243   : > { %v1972_v5 = vadd.f32 %v1964_v23, %v1962_v50 }
 0x244   : > { %v1966_v57 = vrot.slane %v1965_v24, 4 }
 0x245   : > { %v1973_v40 = vrot.slane %v1972_v5, 4 }
 0x246   : > { %v1967_v53 = vadd.f32 %v1966_v57, %v1965_v24 }
 0x247   : > { %v1974_v28 = vadd.f32 %v1973_v40, %v1972_v5 }
 0x248   : > { %v1968_v30 = vrot.slane %v1967_v53, 2 }
 0x249   : > { %v1975_v0 = vrot.slane %v1974_v28, 2 }
 0x24a   : > { %v1969_v63 = vadd.f32 %v1968_v30, %v1967_v53 }
 0x24b   : > { %v1976_v12 = vadd.f32 %v1975_v0, %v1974_v28 }
 0x24c   : > { %v1970_v33 = vrot.slane %v1969_v63, 1 }
 0x24d   : > { %v1977_v14 = vrot.slane %v1976_v12, 1 }
 0x24e   : > { %v1971_v47 = vadd.f32 %v1970_v33, %v1969_v63 }
 0x24f   : > { %v1978_v3 = vadd.f32 %v1977_v14, %v1976_v12 }
 0x250   : > { %v1979_v31 = vmul.f32 0.0625, %v1971_v47 }
 0x251   : > { %v1980_v56 = vmul.f32 0.0625, %v1978_v3 }
 0x252   : > { %v1981_v9 = vadd.f32 1e-06, %v1979_v31  ;;  %v2033_v31 = vld [vmem:[%s3494_s13] sm:$0xff] }
 0x253   : > { %v1982_v35 = vadd.f32 1e-06, %v1980_v56  ;;  %v2043_v56 = vld [vmem:[%s3494_s13 + $0x50] sm:$0xff] }
 0x254   : > { %2723 = vrsqrt.f32 %v1981_v9  ;;  %v2034_v9 = vld [vmem:[%s3494_s13 + $0x8] sm:$0xff] }
 0x255   : > { %2725 = vrsqrt.f32 %v1982_v35  ;;  %v2044_v35 = vld [vmem:[%s3494_s13 + $0x58] sm:$0xff] }
 0x25e   : > { %v2724_v25 = vpop.eup %2723 }
 0x25f   : > { %v2726_v37 = vpop.eup %2725  ;;  %v1985_v7 = vmul.f32 %v2724_v25, %v1957_v18  ;;  %v1987_v38 = vmul.f32 %v2724_v25, %v1959_v34  ;;  %v2035_v25 = vld [vmem:[%s3494_s13 + $0x10] sm:$0xff] }
 0x260   : > { %v1986_v39 = vmul.f32 %v2726_v37, %v1958_v22  ;;  %v1988_v62 = vmul.f32 %v2726_v37, %v1960_v43  ;;  %v2045_v37 = vld [vmem:[%s3494_s13 + $0x60] sm:$0xff] }
 0x261   : > { %v1989_v45 = vmul.f32 %v1985_v7, %v2981_v48  ;;  %v1991_v52 = vmul.f32 %v1987_v38, %v2983_v49  ;;  %v2036_v7 = vld [vmem:[%s3494_s13 + $0x18] sm:$0xff]  ;;  %v2046_v38 = vld [vmem:[%s3494_s13 + $0x68] sm:$0xff] }
 0x262   : > { %v1990_v41 = vmul.f32 %v1986_v39, %v2981_v48  ;;  %v1992_v2 = vmul.f32 %v1988_v62, %v2983_v49  ;;  %v2037_v39 = vld [vmem:[%s3494_s13 + $0x20] sm:$0xff]  ;;  %v2047_v62 = vld [vmem:[%s3494_s13 + $0x70] sm:$0xff] }
 0x263   : > { %v1993_v55 = vadd.f32 %v1989_v45, %v2986_v51  ;;  %v1995_v58 = vadd.f32 %v1991_v52, %v2992_v54  ;;  %v2038_v45 = vld [vmem:[%s3494_s13 + $0x28] sm:$0xff]  ;;  %v2048_v52 = vld [vmem:[%s3494_s13 + $0x78] sm:$0xff] }
 0x264   : > { %v1994_v60 = vadd.f32 %v1990_v41, %v2986_v51  ;;  %v1996_v44 = vadd.f32 %v1992_v2, %v2992_v54  ;;  %v2039_v41 = vld [vmem:[%s3494_s13 + $0x30] sm:$0xff]  ;;  %v2040_v2 = vld [vmem:[%s3494_s13 + $0x38] sm:$0xff] }
 0x265   : > { %v2003_v36 = vmul.f32 %v1995_v58, %v1995_v58  ;;  %v2001_v46 = vmul.f32 %v1993_v55, %v1993_v55  ;;  %v1997_v26 = vmul.f32 0.5, %v1993_v55  ;;  %v1999_v0 = vmul.f32 0.5, %v1995_v58 }
 0x266   : > { %v2002_v61 = vmul.f32 %v1994_v60, %v1994_v60  ;;  %v2004_v59 = vmul.f32 %v1996_v44, %v1996_v44  ;;  %v1998_v5 = vmul.f32 0.5, %v1994_v60  ;;  %v2000_v53 = vmul.f32 0.5, %v1996_v44 }
 0x267   : > { %v2007_v10 = vmul.f32 %v2003_v36, %v1995_v58  ;;  %v2005_v15 = vmul.f32 %v2001_v46, %v1993_v55 }
 0x268   : > { %v2006_v32 = vmul.f32 %v2002_v61, %v1994_v60  ;;  %v2008_v27 = vmul.f32 %v2004_v59, %v1996_v44 }
 0x269   : > { %v2011_v16 = vmul.f32 0.044715, %v2007_v10  ;;  %v2009_v48 = vmul.f32 0.044715, %v2005_v15 }
 0x26a   : > { %v2010_v17 = vmul.f32 0.044715, %v2006_v32  ;;  %v2012_v49 = vmul.f32 0.044715, %v2008_v27 }
 0x26b   : > { %v2013_v18 = vadd.f32 %v2009_v48, %v1993_v55  ;;  %v2015_v34 = vadd.f32 %v2011_v16, %v1995_v58  ;;  %v2041_v55 = vld [vmem:[%s3494_s13 + $0x40] sm:$0xff]  ;;  %v2042_v58 = vld [vmem:[%s3494_s13 + $0x48] sm:$0xff] }
 0x26c   : > { %v2014_v22 = vadd.f32 %v2010_v17, %v1994_v60  ;;  %v2016_v43 = vadd.f32 %v2012_v49, %v1996_v44  ;;  %v2068_v60 = vpop.permute.xlu0 %2067 }
 0x26d   : > { %v2017_v20 = vmul.f32 0.7978846, %v2013_v18  ;;  %v2019_v54 = vmul.f32 0.7978846, %v2015_v34 }
 0x26e   : > { %v2018_v51 = vmul.f32 0.7978846, %v2014_v22  ;;  %v2020_v42 = vmul.f32 0.7978846, %v2016_v43 }
 0x26f   : > { %2727 = vtanh.f32 %v2017_v20 }
 0x270   : > { %2729 = vtanh.f32 %v2018_v51  ;;  %v2078_v44 = vpop.permute.xlu0 %2077 }
 0x271   : > { %2731 = vtanh.f32 %v2020_v42 }
 0x272   : > { %2733 = vtanh.f32 %v2019_v54 }
 0x274   : > { %v2088_v36 = vpop.permute.xlu0 %2087 }
 0x278   : > { %v3412_v46 = vpop.permute.xlu0 %2097 }
 0x279   : > { %v2728_v21 = vpop.eup %2727 }
 0x27a   : > { %v2730_v50 = vpop.eup %2729  ;;  %v2025_v23 = vadd.f32 1.0, %v2728_v21 }
 0x27b   : > { %v2732_v24 = vpop.eup %2731  ;;  %v2026_v57 = vadd.f32 1.0, %v2730_v50 }
 0x27c   : > { %v2734_v40 = vpop.eup %2733  ;;  %v2028_v28 = vadd.f32 1.0, %v2732_v24  ;;  %v2029_v12 = vmul.f32 %v2025_v23, %v1997_v26  ;;  %v3414_v61 = vpop.permute.xlu0 %2107 }
 0x27d   : > { %v2030_v30 = vmul.f32 %v2026_v57, %v1998_v5  ;;  %v2027_v63 = vadd.f32 1.0, %v2734_v40 }
 0x27e   : > { %v2032_v33 = vmul.f32 %v2028_v28, %v2000_v53 }
 0x27f   : > { %v2031_v14 = vmul.f32 %v2027_v63, %v1999_v0 }
 0x280   : > { %v2613_v47 = vpack.c.bf16 %v2032_v33, %v2030_v30  ;;  %v2118_v59 = vpop.permute.xlu0 %2117 }
 0x281   : > { %v2615_v3 = vpack.c.bf16 %v2031_v14, %v2029_v12 }
 0x282   : > { %2614 = vmatprep.subr.bf16.mxu0 %v2613_v47  ;;  %2617 = vmatprep.subr.bf16.mxu1 %v2613_v47 }
 0x283   : > { %2616 = vmatpush1.bf16.msra.mxu0 %v2615_v3  ;;  %2618 = vmatpush1.bf16.msra.mxu1 %v2615_v3 }
 0x284   : > { %v2128_v54 = vpop.permute.xlu0 %2127 }
 0x286   : > { %2593 = vmatmul.mubr.msk.f32.vlgmr.msra.gmra.mrb[8].mxu0 %vm2145_vm9, %v2033_v31  ;;  %2603 = vmatmul.mubr.msk.f32.vlgmr.msra.gmra.mrb[4].mxu1 %vm2145_vm9, %v2043_v56 }
 0x287   : > { %2264 = vmatprep.mubr.f32.mxu0 %v2760_v4  ;;  %2324 = vmatprep.mubr.f32.mxu1 %v2760_v4 }
 0x288   : > { %v2138_v33 = vpop.permute.xlu0 %2137 }
 0x28a   : > { %2594 = vmatmul.mubr.msk.f32.gmra.mrb[10].mxu0 %vm2145_vm9, %v2034_v9  ;;  %2604 = vmatmul.mubr.msk.f32.gmra.mrb[6].mxu1 %vm2145_vm9, %v2044_v35 }
 0x28b   : > { %2270 = vmatprep.mubr.f32.mxu0 %v2760_v4  ;;  %2330 = vmatprep.mubr.f32.mxu1 %v2760_v4 }
 0x28e   : > { %2595 = vmatmul.mubr.msk.f32.gmra.mrb[12].mxu0 %vm2145_vm9, %v2035_v25  ;;  %2605 = vmatmul.mubr.msk.f32.gmra.mrb[8].mxu1 %vm2145_vm9, %v2045_v37 }
 0x28f   : > { %2276 = vmatprep.mubr.f32.mxu0 %v2760_v4  ;;  %2336 = vmatprep.mubr.f32.mxu1 %v2760_v4 }
 0x292   : > { %2596 = vmatmul.mubr.msk.f32.gmra.mrb[14].mxu0 %vm2145_vm9, %v2036_v7  ;;  %2606 = vmatmul.mubr.msk.f32.gmra.mrb[10].mxu1 %vm2145_vm9, %v2046_v38 }
 0x293   : > { %2282 = vmatprep.mubr.f32.mxu0 %v2760_v4  ;;  %2342 = vmatprep.mubr.f32.mxu1 %v2760_v4 }
 0x296   : > { %2597 = vmatmul.mubr.msk.f32.gmra.mrb[16].mxu0 %vm2145_vm9, %v2037_v39  ;;  %2607 = vmatmul.mubr.msk.f32.gmra.mrb[12].mxu1 %vm2145_vm9, %v2047_v62 }
 0x297   : > { %2288 = vmatprep.mubr.f32.mxu0 %v2760_v4  ;;  %2348 = vmatprep.mubr.f32.mxu1 %v2760_v4 }
 0x29a   : > { %2598 = vmatmul.mubr.msk.f32.gmra.mrb[18].mxu0 %vm2145_vm9, %v2038_v45  ;;  %2608 = vmatmul.mubr.msk.f32.gmra.mrb[14].mxu1 %vm2145_vm9, %v2048_v52 }
 0x29b   : > { %2294 = vmatprep.mubr.f32.mxu0 %v2760_v4 }
 0x29e   : > { %2599 = vmatmul.mubr.msk.f32.gmra.mrb[20].mxu0 %vm2145_vm9, %v2039_v41 }
 0x29f   : > { %2300 = vmatprep.mubr.f32.mxu0 %v2760_v4 }
 0x2a2   : > { %2600 = vmatmul.mubr.msk.f32.gmra.mrb[22].mxu0 %vm2145_vm9, %v2040_v2 }
 0x2a3   : > { %2306 = vmatprep.mubr.f32.mxu0 %v2760_v4 }
 0x2a6   : > { %2601 = vmatmul.mubr.msk.f32.gmra.mrb[24].mxu0 %vm2145_vm9, %v2041_v55 }
 0x2a7   : > { %2312 = vmatprep.mubr.f32.mxu0 %v2760_v4 }
 0x2aa   : > { %2602 = vmatmul.mubr.msk.f32.gmra.mrb[26].mxu0 %vm2145_vm9, %v2042_v58 }
 0x359   : > { %v2260_v4 = vpop.f32.mrb[8].mxu0  ;;  %v2320_v10 = vpop.f32.mrb[4].mxu1 }
 0x35a   : > { %v2261_v15 = vadd.f32 %v2260_v4, %v2068_v60  ;;  %v2321_v32 = vadd.f32 %v2320_v10, %v2118_v59  ;;  %v2262_v27 = vpop.f32.mrb[9].mxu0  ;;  %v2322_v16 = vpop.f32.mrb[5].mxu1 }
 0x35b   : > { %v2263_v48 = vadd.f32 %v2262_v27, %v2068_v60  ;;  %v2323_v17 = vadd.f32 %v2322_v16, %v2118_v59 }
 0x35c   : > { %2355 = vst [vmem:[%s3420_s18] sm:$0xff] %v2261_v15  ;;  %2375 = vst [vmem:[%s3420_s18 + $0xa0] sm:$0xff] %v2321_v32 }
 0x35d   : > { %2356 = vst [vmem:[%s3420_s18 + $0x8] sm:$0xff] %v2263_v48  ;;  %2376 = vst [vmem:[%s3420_s18 + $0xa8] sm:$0xff] %v2323_v17  ;;  %v2266_v49 = vpop.f32.mrb[10].mxu0  ;;  %v2326_v18 = vpop.f32.mrb[6].mxu1 }
 0x35e   : > { %v2267_v34 = vadd.f32 %v2266_v49, %v3269_v6  ;;  %v2327_v22 = vadd.f32 %v2326_v18, %v3279_v13  ;;  %v2268_v43 = vpop.f32.mrb[11].mxu0  ;;  %v2328_v20 = vpop.f32.mrb[7].mxu1 }
 0x35f   : > { %v2269_v51 = vadd.f32 %v2268_v43, %v3269_v6  ;;  %v2329_v42 = vadd.f32 %v2328_v20, %v3279_v13 }
 0x360   : > { %2357 = vst [vmem:[%s3420_s18 + $0x10] sm:$0xff] %v2267_v34  ;;  %2377 = vst [vmem:[%s3420_s18 + $0xb0] sm:$0xff] %v2327_v22 }
 0x361   : > { %2358 = vst [vmem:[%s3420_s18 + $0x18] sm:$0xff] %v2269_v51  ;;  %2378 = vst [vmem:[%s3420_s18 + $0xb8] sm:$0xff] %v2329_v42  ;;  %v2272_v21 = vpop.f32.mrb[12].mxu0  ;;  %v2332_v50 = vpop.f32.mrb[8].mxu1 }
 0x362   : > { %v2273_v23 = vadd.f32 %v2272_v21, %v2078_v44  ;;  %v2333_v24 = vadd.f32 %v2332_v50, %v2128_v54  ;;  %v2274_v5 = vpop.f32.mrb[13].mxu0  ;;  %v2334_v57 = vpop.f32.mrb[9].mxu1 }
 0x363   : > { %v2275_v26 = vadd.f32 %v2274_v5, %v2078_v44  ;;  %v2335_v6 = vadd.f32 %v2334_v57, %v2128_v54 }
 0x364   : > { %2359 = vst [vmem:[%s3420_s18 + $0x20] sm:$0xff] %v2273_v23  ;;  %2379 = vst [vmem:[%s3420_s18 + $0xc0] sm:$0xff] %v2333_v24 }
 0x365   : > { %2360 = vst [vmem:[%s3420_s18 + $0x28] sm:$0xff] %v2275_v26  ;;  %2380 = vst [vmem:[%s3420_s18 + $0xc8] sm:$0xff] %v2335_v6  ;;  %v2278_v13 = vpop.f32.mrb[14].mxu0  ;;  %v2338_v40 = vpop.f32.mrb[10].mxu1 }
 0x366   : > { %v2279_v53 = vadd.f32 %v2278_v13, %v3271_v8  ;;  %v2339_v28 = vadd.f32 %v2338_v40, %v3287_v1  ;;  %v2280_v30 = vpop.f32.mrb[15].mxu0  ;;  %v2340_v0 = vpop.f32.mrb[11].mxu1 }
 0x367   : > { %v2281_v63 = vadd.f32 %v2280_v30, %v3271_v8  ;;  %v2341_v12 = vadd.f32 %v2340_v0, %v3287_v1  ;;  %v2143_v1 = vpop.permute.xlu1 %2142 }
 0x368   : > { %2361 = vst [vmem:[%s3420_s18 + $0x30] sm:$0xff] %v2279_v53  ;;  %2381 = vst [vmem:[%s3420_s18 + $0xd0] sm:$0xff] %v2339_v28 }
 0x369   : > { %2362 = vst [vmem:[%s3420_s18 + $0x38] sm:$0xff] %v2281_v63  ;;  %2382 = vst [vmem:[%s3420_s18 + $0xd8] sm:$0xff] %v2341_v12  ;;  %v2284_v14 = vpop.f32.mrb[16].mxu0  ;;  %v2344_v47 = vpop.f32.mrb[12].mxu1 }
 0x36a   : > { %v2285_v3 = vadd.f32 %v2284_v14, %v2088_v36  ;;  %v2345_v31 = vadd.f32 %v2344_v47, %v2138_v33  ;;  %v2286_v56 = vpop.f32.mrb[17].mxu0  ;;  %v2346_v9 = vpop.f32.mrb[13].mxu1 }
 0x36b   : > { %v2287_v35 = vadd.f32 %v2286_v56, %v2088_v36  ;;  %v2347_v8 = vadd.f32 %v2346_v9, %v2138_v33 }
 0x36c   : > { %2363 = vst [vmem:[%s3420_s18 + $0x40] sm:$0xff] %v2285_v3  ;;  %2383 = vst [vmem:[%s3420_s18 + $0xe0] sm:$0xff] %v2345_v31 }
 0x36d   : > { %2364 = vst [vmem:[%s3420_s18 + $0x48] sm:$0xff] %v2287_v35  ;;  %2384 = vst [vmem:[%s3420_s18 + $0xe8] sm:$0xff] %v2347_v8  ;;  %v2290_v25 = vpop.f32.mrb[18].mxu0  ;;  %v2350_v37 = vpop.f32.mrb[14].mxu1 }
 0x36e   : > { %v2291_v7 = vadd.f32 %v2290_v25, %v3273_v29  ;;  %v2351_v38 = vadd.f32 %v2350_v37, %v2143_v1  ;;  %v2292_v39 = vpop.f32.mrb[19].mxu0  ;;  %v2352_v62 = vpop.f32.mrb[15].mxu1 }
 0x36f   : > { %v2293_v45 = vadd.f32 %v2292_v39, %v3273_v29  ;;  %v2353_v52 = vadd.f32 %v2352_v62, %v2143_v1 }
 0x370   : > { %2365 = vst [vmem:[%s3420_s18 + $0x50] sm:$0xff] %v2291_v7  ;;  %2385 = vst [vmem:[%s3420_s18 + $0xf0] sm:$0xff] %v2351_v38 }
 0x371   : > { %2366 = vst [vmem:[%s3420_s18 + $0x58] sm:$0xff] %v2293_v45  ;;  %2386 = vst [vmem:[%s3420_s18 + $0xf8] sm:$0xff] %v2353_v52  ;;  %v2296_v41 = vpop.f32.mrb[20].mxu0 }
 0x372   : > { %v2297_v2 = vadd.f32 %v2296_v41, %v3412_v46  ;;  %v2298_v55 = vpop.f32.mrb[21].mxu0 }
 0x373   : > { %v2299_v58 = vadd.f32 %v2298_v55, %v3412_v46 }
 0x374   : > { %2367 = vst [vmem:[%s3420_s18 + $0x60] sm:$0xff] %v2297_v2 }
 0x375   : > { %2368 = vst [vmem:[%s3420_s18 + $0x68] sm:$0xff] %v2299_v58  ;;  %v2302_v60 = vpop.f32.mrb[22].mxu0 }
 0x376   : > { %v2303_v29 = vadd.f32 %v2302_v60, %v3275_v11  ;;  %v2304_v44 = vpop.f32.mrb[23].mxu0 }
 0x377   : > { %v2305_v36 = vadd.f32 %v2304_v44, %v3275_v11 }
 0x378   : > { %2369 = vst [vmem:[%s3420_s18 + $0x70] sm:$0xff] %v2303_v29 }
 0x379   : > { %2370 = vst [vmem:[%s3420_s18 + $0x78] sm:$0xff] %v2305_v36  ;;  %v2308_v59 = vpop.f32.mrb[24].mxu0 }
 0x37a   : > { %v2309_v4 = vadd.f32 %v2308_v59, %v3414_v61  ;;  %v2310_v10 = vpop.f32.mrb[25].mxu0 }
 0x37b   : > { %v2311_v15 = vadd.f32 %v2310_v10, %v3414_v61 }
 0x37c   : > { %2371 = vst [vmem:[%s3420_s18 + $0x80] sm:$0xff] %v2309_v4 }
 0x37d   : > { %2372 = vst [vmem:[%s3420_s18 + $0x88] sm:$0xff] %v2311_v15  ;;  %v2314_v46 = vpop.f32.mrb[26].mxu0 }
 0x37e   : > { %v2315_v32 = vadd.f32 %v2314_v46, %v3277_v19  ;;  %v2316_v27 = vpop.f32.mrb[27].mxu0 }
 0x37f   : > { %v2317_v16 = vadd.f32 %v2316_v27, %v3277_v19 }
 0x380   : > { %2373 = vst [vmem:[%s3420_s18 + $0x90] sm:$0xff] %v2315_v32 }
 0x381   : > { %2374 = vst [vmem:[%s3420_s18 + $0x98] sm:$0xff] %v2317_v16 }
 0x382 PF: > { %s27_s23 = sadd.s32 1, %s2757_s23   ;;  %s3500_s21 = smov %s2753_s22 }
 0x383   : > { %p24_p5 = scmp.ge.s32.totalorder %s27_s23, 4   ;;  %s3501_s22 = smov %s3503_s24 }
 0x385   :  { %26 = sbr.rel (!%p24_p5) target bundleno = 2 (0x2), region = 128 }

</bundles_post_ra>
